<compile_context>
chip_gen: v5e
topology: v5e:2x2
jax: 0.10.0
libtpu: 0.0.40
codegen_flags: <defaults>
</compile_context>

<pallas_src>
import jax
import jax.numpy as jnp
from jax.experimental import pallas as pl
from jax.experimental.pallas import tpu as pltpu


def _mlp_kernel(z_ref, w1_ref, b1_ref, w23_ref, b23_ref, w4_ref, b4_ref, o_ref):
    G = o_ref.shape[1]                      # number of 128-row groups in this tile
    prec = jax.lax.Precision.DEFAULT

    z = z_ref[...]                                                  # (T, Z)

    # Linear(Z, 50) + Softplus
    h = jnp.dot(z, w1_ref[...], preferred_element_type=jnp.float32,
                precision=prec) + b1_ref[...]
    h = jnp.logaddexp(h, 0.0)

    # Folded Linear(50,10)@Linear(10,50) -> Linear(50,50), + Softplus
    h = jnp.dot(h, w23_ref[...], preferred_element_type=jnp.float32,
                precision=prec) + b23_ref[...]
    h = jnp.logaddexp(h, 0.0)                                       # (T, 50)

    # Linear(50, 1): VPU broadcast-multiply + XLU lane reduction (no N=1 MXU
    # pass).  keepdims keeps the reduced value on sublanes -> no relayout yet.
    w = h * w4_ref[...]                                             # (T, 50)
    w = w.reshape(G, 128, w.shape[-1])                              # leading-dim split
    logit = jnp.sum(w, axis=-1, keepdims=True)                      # (G, 128, 1)

    # Sublane -> lane relayout: spread each group's 128 sublane values across
    # 128 lanes with a one-hot mask, then reduce over the sublane axis.
    # jnp.where (not multiply) so NaN/Inf from garbage rows of a ragged last
    # tile stay in their own lane and cannot contaminate valid outputs.
    kk = jax.lax.broadcasted_iota(jnp.int32, (128, 128), 0)
    ll = jax.lax.broadcasted_iota(jnp.int32, (128, 128), 1)
    spread = jnp.where(kk == ll, logit, 0.0)                        # (G, 128, 128)
    dense = jnp.sum(spread, axis=1)                                 # (G, 128) lane-dense

    # Bias + Sigmoid on dense vregs, lane-dense (unmasked) store.
    o_ref[0] = jax.nn.sigmoid(dense + b4_ref[...])


def _round_up(x, m):
    return ((x + m - 1) // m) * m


def classifier_ori_forward(z, params, tile_b=8192):
    """z: (B, z_dim) float32.  Returns (B, 1) float32 in (0, 1)."""
    (w1, b1), (w2, b2), (w3, b3), (w4, b4) = params
    B, Z = z.shape
    H1 = w1.shape[1]        # 50
    H3 = w3.shape[1]        # 50

    hp = jax.lax.Precision.HIGHEST
    # Exact fold of the activation-free middle pair into a single (50, 50) layer.
    w23 = jnp.dot(w2, w3, precision=hp).astype(jnp.float32)
    b23 = (jnp.dot(b2, w3, precision=hp) + b3).astype(jnp.float32)
    w4r = jnp.transpose(w4)                 # (1, H3) row for the VPU multiply

    # Batch tile: multiple of 128 (lane-dense 128-row output groups), capped at
    # ceil(B/2) (rounded to 128) so >=2 grid steps exist when possible (v7x),
    # floor 128.  B need not divide the tile; the last block is ragged.
    tile_b = _round_up(max(int(tile_b), 128), 128)
    half = _round_up(-(-B // 2), 128)
    tile_b = max(128, min(tile_b, half))
    G = tile_b // 128
    n_tiles = pl.cdiv(B, tile_b)
    Bp = n_tiles * tile_b

    # Advisory cost hint for XLA's scheduler around the custom call.
    flops = 2 * Bp * (Z * H1 + H1 * H3 + H3)
    transcendentals = Bp * (2 * (H1 + H3) + 1)
    weight_bytes = 4 * (Z * H1 + H1 + H1 * H3 + H3 + H3 + 1)
    bytes_accessed = Bp * Z * 4 + Bp * 4 + weight_bytes

    const = lambda i: (0, 0)                # weights: same block every grid step
    out = pl.pallas_call(
        _mlp_kernel,
        out_shape=jax.ShapeDtypeStruct((n_tiles, G, 128), jnp.float32),
        grid=(n_tiles,),
        in_specs=[
            pl.BlockSpec((tile_b, Z), lambda i: (i, 0)),   # z tile (streamed)
            pl.BlockSpec((Z, H1), const),                  # w1
            pl.BlockSpec((1, H1), const),                  # b1
            pl.BlockSpec((H1, H3), const),                 # w23 (folded)
            pl.BlockSpec((1, H3), const),                  # b23 (folded)
            pl.BlockSpec((1, H3), const),                  # w4 as a row
            pl.BlockSpec((1, 1), const),                   # b4
        ],
        out_specs=pl.BlockSpec((1, G, 128), lambda i: (i, 0, 0)),
        compiler_params=pltpu.CompilerParams(
            dimension_semantics=("parallel",),
            vmem_limit_bytes=64 * 1024 * 1024,
        ),
        cost_estimate=pl.CostEstimate(
            flops=flops,
            transcendentals=transcendentals,
            bytes_accessed=bytes_accessed,
        ),
    )(z, w1, b1, w23, b23, w4r, b4)

    # (n_tiles, G, 128) is row-major batch order; drop the ragged tail.
    return out.reshape(-1)[:B].reshape(B, 1)


def init_params(key, z_dim=102):
    """Deterministic synthetic init (PyTorch-Linear-like uniform ranges)."""
    dims = [(z_dim, 50), (50, 10), (10, 50), (50, 1)]
    params = []
    for (fan_in, fan_out) in dims:
        key, kw, kb = jax.random.split(key, 3)
        bound = 1.0 / jnp.sqrt(fan_in)
        # Stored as (in, out) (transpose of torch Linear.weight); biases as (1, out).
        w = jax.random.uniform(kw, (fan_in, fan_out), jnp.float32, -bound, bound)
        b = jax.random.uniform(kb, (1, fan_out), jnp.float32, -bound, bound)
        params.append((w, b))
    return params


def _reference(z, params):
    """Unfused 4-linear reference matching the original torch module."""
    (w1, b1), (w2, b2), (w3, b3), (w4, b4) = params
    h = jnp.logaddexp(z @ w1 + b1, 0.0)
    h = h @ w2 + b2
    h = jnp.logaddexp(h @ w3 + b3, 0.0)
    return jax.nn.sigmoid(h @ w4 + b4)


if __name__ == "__main__":
    key = jax.random.PRNGKey(0)
    kz, kp, kz2 = jax.random.split(key, 3)

    B, Z_DIM = 8, 102                 # args.data == 'adult' -> z_dim = 102
    z = jax.random.normal(kz, (B, Z_DIM), jnp.float32)
    params = init_params(kp, Z_DIM)

    out = jax.block_until_ready(classifier_ori_forward(z, params))
    ref = _reference(z, params)
    assert out.shape == (B, 1)
    assert bool(jnp.all(jnp.isfinite(out)))
    # Tolerance covers the exact-but-reordered folded middle layer and the
    # exact-f32 VPU final layer vs. the TPU default-precision reference dots.
    assert jnp.allclose(out, ref, atol=1e-4, rtol=1e-4), "mismatch vs JAX reference"

    # Multi-tile, G>1, ragged last block (B not a multiple of the tile).
    B2 = 300
    z2 = jax.random.normal(kz2, (B2, Z_DIM), jnp.float32)
    out2 = jax.block_until_ready(classifier_ori_forward(z2, params))
    ref2 = _reference(z2, params)
    assert out2.shape == (B2, 1)
    assert bool(jnp.all(jnp.isfinite(out2)))
    assert jnp.allclose(out2, ref2, atol=1e-4, rtol=1e-4), "mismatch (ragged batch)"

    print("KERNEL_OK")
</pallas_src>

<mosaic_0001>
module attributes {stable_mosaic.version = 11 : i64} {
  func.func @_mlp_kernel(%arg0: i32, %arg1: memref<128x102xf32, #tpu.memory_space<vmem>>, %arg2: memref<102x50xf32, #tpu.memory_space<vmem>>, %arg3: memref<1x50xf32, #tpu.memory_space<vmem>>, %arg4: memref<50x50xf32, #tpu.memory_space<vmem>>, %arg5: memref<1x50xf32, #tpu.memory_space<vmem>>, %arg6: memref<1x50xf32, #tpu.memory_space<vmem>>, %arg7: memref<1x1xf32, #tpu.memory_space<vmem>>, %arg8: memref<1x1x128xf32, #tpu.memory_space<vmem>>) attributes {dimension_semantics = [#tpu.dimension_semantics<parallel>], iteration_bounds = array<i64: 1>, scalar_prefetch = 0 : i64, scratch_operands = 0 : i64, tpu.core_type = #tpu.core_type<tc>, window_params = [{transform_indices = @transform_0, window_bounds = array<i64: 128, 102>}, {pipeline_mode = #tpu.pipeline_mode<synchronous>, transform_indices = @transform_1, window_bounds = array<i64: 102, 50>}, {pipeline_mode = #tpu.pipeline_mode<synchronous>, transform_indices = @transform_2, window_bounds = array<i64: 1, 50>}, {pipeline_mode = #tpu.pipeline_mode<synchronous>, transform_indices = @transform_3, window_bounds = array<i64: 50, 50>}, {pipeline_mode = #tpu.pipeline_mode<synchronous>, transform_indices = @transform_4, window_bounds = array<i64: 1, 50>}, {pipeline_mode = #tpu.pipeline_mode<synchronous>, transform_indices = @transform_5, window_bounds = array<i64: 1, 50>}, {pipeline_mode = #tpu.pipeline_mode<synchronous>, transform_indices = @transform_6, window_bounds = array<i64: 1, 1>}, {transform_indices = @transform_7, window_bounds = array<i64: 1, 1, 128>}]} {
    %c0 = arith.constant 0 : index
    %c0_0 = arith.constant 0 : index
    %0 = vector.load %arg1[%c0, %c0_0] : memref<128x102xf32, #tpu.memory_space<vmem>>, vector<128x102xf32>
    %c0_1 = arith.constant 0 : index
    %c0_2 = arith.constant 0 : index
    %1 = vector.load %arg2[%c0_1, %c0_2] : memref<102x50xf32, #tpu.memory_space<vmem>>, vector<102x50xf32>
    %cst = arith.constant dense<0.000000e+00> : vector<128x50xf32>
    %2 = tpu.matmul %0, %1, %cst {dimension_numbers = #tpu.dot_dimension_numbers<[1], [0], [0], [1], [0, 0, 1, 1], [], []>} : vector<128x102xf32>, vector<102x50xf32>, vector<128x50xf32> -> vector<128x50xf32>
    %c0_3 = arith.constant 0 : index
    %c0_4 = arith.constant 0 : index
    %3 = vector.load %arg3[%c0_3, %c0_4] : memref<1x50xf32, #tpu.memory_space<vmem>>, vector<1x50xf32>
    %4 = vector.broadcast %3 : vector<1x50xf32> to vector<128x50xf32>
    %5 = arith.addf %2, %4 : vector<128x50xf32>
    %cst_5 = arith.constant 0.000000e+00 : f32
    %6 = vector.broadcast %cst_5 : f32 to vector<128x50xf32>
    %7 = arith.maximumf %5, %6 : vector<128x50xf32>
    %8 = vector.broadcast %cst_5 : f32 to vector<128x50xf32>
    %9 = arith.subf %5, %8 : vector<128x50xf32>
    %10 = arith.cmpf one, %9, %9 : vector<128x50xf32>
    %11 = vector.broadcast %cst_5 : f32 to vector<128x50xf32>
    %12 = arith.addf %5, %11 : vector<128x50xf32>
    %13 = math.absf %9 : vector<128x50xf32>
    %cst_6 = arith.constant 0.000000e+00 : f32
    %14 = vector.broadcast %cst_6 : f32 to vector<128x50xf32>
    %15 = arith.subf %14, %13 : vector<128x50xf32>
    %16 = math.exp %15 : vector<128x50xf32>
    %17 = math.log1p %16 : vector<128x50xf32>
    %18 = arith.addf %7, %17 : vector<128x50xf32>
    %19 = arith.select %10, %12, %18 : vector<128x50xi1>, vector<128x50xf32>
    %c0_7 = arith.constant 0 : index
    %c0_8 = arith.constant 0 : index
    %20 = vector.load %arg4[%c0_7, %c0_8] : memref<50x50xf32, #tpu.memory_space<vmem>>, vector<50x50xf32>
    %cst_9 = arith.constant dense<0.000000e+00> : vector<128x50xf32>
    %21 = tpu.matmul %19, %20, %cst_9 {dimension_numbers = #tpu.dot_dimension_numbers<[1], [0], [0], [1], [0, 0, 1, 1], [], []>} : vector<128x50xf32>, vector<50x50xf32>, vector<128x50xf32> -> vector<128x50xf32>
    %c0_10 = arith.constant 0 : index
    %c0_11 = arith.constant 0 : index
    %22 = vector.load %arg5[%c0_10, %c0_11] : memref<1x50xf32, #tpu.memory_space<vmem>>, vector<1x50xf32>
    %23 = vector.broadcast %22 : vector<1x50xf32> to vector<128x50xf32>
    %24 = arith.addf %21, %23 : vector<128x50xf32>
    %cst_12 = arith.constant 0.000000e+00 : f32
    %25 = vector.broadcast %cst_12 : f32 to vector<128x50xf32>
    %26 = arith.maximumf %24, %25 : vector<128x50xf32>
    %27 = vector.broadcast %cst_12 : f32 to vector<128x50xf32>
    %28 = arith.subf %24, %27 : vector<128x50xf32>
    %29 = arith.cmpf one, %28, %28 : vector<128x50xf32>
    %30 = vector.broadcast %cst_12 : f32 to vector<128x50xf32>
    %31 = arith.addf %24, %30 : vector<128x50xf32>
    %32 = math.absf %28 : vector<128x50xf32>
    %cst_13 = arith.constant 0.000000e+00 : f32
    %33 = vector.broadcast %cst_13 : f32 to vector<128x50xf32>
    %34 = arith.subf %33, %32 : vector<128x50xf32>
    %35 = math.exp %34 : vector<128x50xf32>
    %36 = math.log1p %35 : vector<128x50xf32>
    %37 = arith.addf %26, %36 : vector<128x50xf32>
    %38 = arith.select %29, %31, %37 : vector<128x50xi1>, vector<128x50xf32>
    %c0_14 = arith.constant 0 : index
    %c0_15 = arith.constant 0 : index
    %39 = vector.load %arg6[%c0_14, %c0_15] : memref<1x50xf32, #tpu.memory_space<vmem>>, vector<1x50xf32>
    %40 = vector.broadcast %39 : vector<1x50xf32> to vector<128x50xf32>
    %41 = arith.mulf %38, %40 : vector<128x50xf32>
    %42 = vector.shape_cast %41 : vector<128x50xf32> to vector<1x128x50xf32>
    %cst_16 = arith.constant dense<0.000000e+00> : vector<1x128xf32>
    %43 = vector.multi_reduction <add>, %42, %cst_16 [2] : vector<1x128x50xf32> to vector<1x128xf32>
    %44 = vector.shape_cast %43 : vector<1x128xf32> to vector<1x128x1xf32>
    %45 = tpu.iota {dimensions = array<i32: 0>} : vector<128x128xi32>
    %46 = tpu.iota {dimensions = array<i32: 1>} : vector<128x128xi32>
    %47 = arith.cmpi eq, %45, %46 : vector<128x128xi32>
    %cst_17 = arith.constant 0.000000e+00 : f32
    %48 = vector.shape_cast %47 : vector<128x128xi1> to vector<1x128x128xi1>
    %49 = vector.shape_cast %44 : vector<1x128x1xf32> to vector<1x128x1xf32>
    %50 = vector.broadcast %49 : vector<1x128x1xf32> to vector<1x128x128xf32>
    %51 = vector.broadcast %cst_17 : f32 to vector<1x128x128xf32>
    %52 = arith.select %48, %50, %51 : vector<1x128x128xi1>, vector<1x128x128xf32>
    %cst_18 = arith.constant dense<0.000000e+00> : vector<1x128xf32>
    %53 = vector.multi_reduction <add>, %52, %cst_18 [1] : vector<1x128x128xf32> to vector<1x128xf32>
    %c0_19 = arith.constant 0 : index
    %c0_20 = arith.constant 0 : index
    %54 = vector.load %arg7[%c0_19, %c0_20] : memref<1x1xf32, #tpu.memory_space<vmem>>, vector<1x1xf32>
    %55 = vector.broadcast %54 : vector<1x1xf32> to vector<1x128xf32>
    %56 = arith.addf %53, %55 : vector<1x128xf32>
    %57 = arith.negf %56 : vector<1x128xf32>
    %58 = math.exp %57 : vector<1x128xf32>
    %cst_21 = arith.constant 1.000000e+00 : f32
    %59 = vector.broadcast %cst_21 : f32 to vector<1x128xf32>
    %60 = arith.addf %59, %58 : vector<1x128xf32>
    %61 = arith.divf %59, %60 : vector<1x128xf32>
    %c0_22 = arith.constant 0 : index
    %c0_23 = arith.constant 0 : index
    %c0_24 = arith.constant 0 : index
    %62 = vector.load %arg8[%c0_22, %c0_23, %c0_24] : memref<1x1x128xf32, #tpu.memory_space<vmem>>, vector<1x1x128xf32>
    %63 = vector.shape_cast %62 : vector<1x1x128xf32> to vector<1x128xf32>
    %64 = vector.shape_cast %61 : vector<1x128xf32> to vector<1x1x128xf32>
    tpu.vector_store %arg8[%c0_22, %c0_23, %c0_24], %64 {strides = array<i32>} : memref<1x1x128xf32, #tpu.memory_space<vmem>>, vector<1x1x128xf32>,
    return
  }
  func.func @transform_0(%arg0: i32) -> (i32, i32) {
    %c0_i32 = arith.constant 0 : i32
    %c0_i32_0 = arith.constant 0 : i32
    return %arg0, %c0_i32 : i32, i32
  }
  func.func @transform_1(%arg0: i32) -> (i32, i32) {
    %c0_i32 = arith.constant 0 : i32
    %c0_i32_0 = arith.constant 0 : i32
    %c0_i32_1 = arith.constant 0 : i32
    return %c0_i32, %c0_i32_0 : i32, i32
  }
  func.func @transform_2(%arg0: i32) -> (i32, i32) {
    %c0_i32 = arith.constant 0 : i32
    %c0_i32_0 = arith.constant 0 : i32
    %c0_i32_1 = arith.constant 0 : i32
    return %c0_i32, %c0_i32_0 : i32, i32
  }
  func.func @transform_3(%arg0: i32) -> (i32, i32) {
    %c0_i32 = arith.constant 0 : i32
    %c0_i32_0 = arith.constant 0 : i32
    %c0_i32_1 = arith.constant 0 : i32
    return %c0_i32, %c0_i32_0 : i32, i32
  }
  func.func @transform_4(%arg0: i32) -> (i32, i32) {
    %c0_i32 = arith.constant 0 : i32
    %c0_i32_0 = arith.constant 0 : i32
    %c0_i32_1 = arith.constant 0 : i32
    return %c0_i32, %c0_i32_0 : i32, i32
  }
  func.func @transform_5(%arg0: i32) -> (i32, i32) {
    %c0_i32 = arith.constant 0 : i32
    %c0_i32_0 = arith.constant 0 : i32
    %c0_i32_1 = arith.constant 0 : i32
    return %c0_i32, %c0_i32_0 : i32, i32
  }
  func.func @transform_6(%arg0: i32) -> (i32, i32) {
    %c0_i32 = arith.constant 0 : i32
    %c0_i32_0 = arith.constant 0 : i32
    %c0_i32_1 = arith.constant 0 : i32
    return %c0_i32, %c0_i32_0 : i32, i32
  }
  func.func @transform_7(%arg0: i32) -> (i32, i32, i32) {
    %c0_i32 = arith.constant 0 : i32
    %c0_i32_0 = arith.constant 0 : i32
    %c0_i32_1 = arith.constant 0 : i32
    return %arg0, %c0_i32, %c0_i32_0 : i32, i32, i32
  }
}

</mosaic_0001>

<bundles_post_ra>
// kernel: tpu_custom_call.1
= control target key start
LH: loop header
LB: loop body
LE: loop exit
PB: predicated region body
PF: predicated region fallthrough
CT: control target
= control target key end

     0   :  { %s1926_s0 = inlined_call_operand.vmem [shape: f32[8,102], index: 0, kind: input, shape index: {}]   ;;  %s1927_s1 = inlined_call_operand.vmem [shape: f32[102,50], index: 1, kind: input, shape index: {}]   ;;  %s1928_s2 = inlined_call_operand.vmem [shape: f32[1,50], index: 2, kind: input, shape index: {}]   ;;  %s1929_s3 = inlined_call_operand.vmem [shape: f32[50,50], index: 3, kind: input, shape index: {}]   ;;  %s1930_s4 = inlined_call_operand.vmem [shape: f32[1,50], index: 4, kind: input, shape index: {}]   ;;  %s1931_s5 = inlined_call_operand.vmem [shape: f32[1,50], index: 5, kind: input, shape index: {}]   ;;  %s1932_s6 = inlined_call_operand.<no memory space> [shape: f32[1,1], index: 6, kind: input, shape index: {}]   ;;  %s1933_s7 = inlined_call_operand.hbm [shape: f32[1,1,128], index: 7, kind: output, shape index: {}]  }
   0x1   :  { %v12_v0 = vstv %s1932_s6 }
   0x2   :  { %13 = vst [vmem:[#allocation2] sm:$0x1] %v12_v0 }
   0x3   :  { %v57_v1 = vld [vmem:[%s1927_s1 + $0x60] sm:$0x3f]  ;;  %vm111_vm0 = vcmask 1045504   ;;  %v56_v2 = vld [vmem:[%s1927_s1 + $0x58] sm:$0xff]  ;;  %v55_v3 = vld [vmem:[%s1927_s1 + $0x50] sm:$0xff] }
   0x4   :  { %1069 = vmatpush.msk.msra.mxu0 %vm111_vm0, %v57_v1  ;;  %1104 = vmatpush.msk.msra.mxu2 %vm111_vm0, %v57_v1  ;;  %v54_v4 = vld [vmem:[%s1927_s1 + $0x48] sm:$0xff]  ;;  %v53_v5 = vld [vmem:[%s1927_s1 + $0x40] sm:$0xff] }
   0x6   :  { %119 = vmatpush.msra.mxu0 %v56_v2  ;;  %1105 = vmatpush.msra.mxu2 %v56_v2 }
   0x8   :  { %120 = vmatpush.msra.mxu0 %v55_v3  ;;  %1106 = vmatpush.msra.mxu2 %v55_v3 }
   0xa   :  { %121 = vmatpush.msra.mxu0 %v54_v4  ;;  %1107 = vmatpush.msra.mxu2 %v54_v4 }
   0xb   :  { %14 = vsyncpa [#allocation4], 0  ;;  %v52_v6 = vld [vmem:[%s1927_s1 + $0x38] sm:$0xff]  ;;  %v51_v7 = vld [vmem:[%s1927_s1 + $0x30] sm:$0xff]  ;;  %vm62_vm1 = vcmask 834560   ;;  %vm528_vm2 = vcmask 1041408  }
   0xc   :  { %122 = vmatpush.msra.mxu0 %v53_v5  ;;  %1108 = vmatpush.msra.mxu2 %v53_v5  ;;  %v50_v8 = vld [vmem:[%s1927_s1 + $0x28] sm:$0xff]  ;;  %v49_v9 = vld [vmem:[%s1927_s1 + $0x20] sm:$0xff]  ;;  %v48_v10 = vld [vmem:[%s1927_s1 + $0x18] sm:$0xff]  ;;  %vm479_vm4 = vcmask 408576   ;;  %s1060_s29 = sshll.u32 %s1933_s7, 4  ;;  %s1061_s29 = int_to_ptr.hbm [resolvable:$true] %s1060_s29 }
   0xd   :  { %v47_v11 = vld [vmem:[%s1927_s1 + $0x10] sm:$0xff]  ;;  %v46_v12 = vld [vmem:[%s1927_s1 + $0x8] sm:$0xff]  ;;  %v45_v13 = vld [vmem:[%s1927_s1] sm:$0xff] }
   0xe   :  { %123 = vmatpush.msra.mxu0 %v52_v6  ;;  %1109 = vmatpush.msra.mxu2 %v52_v6  ;;  %v29_v14 = vld [vmem:[%s1926_s0] sm:$0xff]  ;;  %v36_v15 = vld [vmem:[%s1926_s0 + $0x38] sm:$0xff]  ;;  %v30_v16 = vld [vmem:[%s1926_s0 + $0x8] sm:$0xff] }
   0xf   :  { %v37_v17 = vld [vmem:[%s1926_s0 + $0x40] sm:$0xff]  ;;  %v31_v18 = vld [vmem:[%s1926_s0 + $0x10] sm:$0xff]  ;;  %v38_v19 = vld [vmem:[%s1926_s0 + $0x48] sm:$0xff] }
  0x10   :  { %124 = vmatpush.msra.mxu0 %v51_v7  ;;  %1110 = vmatpush.msra.mxu2 %v51_v7  ;;  %v32_v20 = vld [vmem:[%s1926_s0 + $0x18] sm:$0xff]  ;;  %v39_v21 = vld [vmem:[%s1926_s0 + $0x50] sm:$0xff]  ;;  %v33_v22 = vld [vmem:[%s1926_s0 + $0x20] sm:$0xff] }
  0x11   :  { %v40_v23 = vld [vmem:[%s1926_s0 + $0x58] sm:$0xff]  ;;  %v34_v24 = vld [vmem:[%s1926_s0 + $0x28] sm:$0xff]  ;;  %v41_v25 = vld [vmem:[%s1926_s0 + $0x60] sm:$0xff] }
  0x12   :  { %125 = vmatpush.msra.mxu0 %v50_v8  ;;  %1111 = vmatpush.msra.mxu2 %v50_v8  ;;  %v35_v26 = vld [vmem:[%s1926_s0 + $0x30] sm:$0xff]  ;;  %v42_v27 = vld [vmem:[%s1926_s0 + $0x68] sm:$0xff]  ;;  %v44_v29 = vld [vmem:[%s1926_s0 + $0x78] sm:$0xff] }
  0x13   :  { %v43_v28 = vld [vmem:[%s1926_s0 + $0x70] sm:$0xff]  ;;  %v473_v31 = vld [vmem:[%s1929_s3 + $0x28] sm:$0xff]  ;;  %v472_v32 = vld [vmem:[%s1929_s3 + $0x20] sm:$0xff] }
  0x14   :  { %126 = vmatpush.msra.mxu0 %v49_v9  ;;  %1112 = vmatpush.msra.mxu2 %v49_v9  ;;  %v474_v30 = vld [vmem:[%s1929_s3 + $0x30] sm:$0x3]  ;;  %v471_v33 = vld [vmem:[%s1929_s3 + $0x18] sm:$0xff]  ;;  %v469_v35 = vld [vmem:[%s1929_s3 + $0x8] sm:$0xff] }
  0x15   :  { %1086 = vmatpush.msk.msra.mxu1 %vm528_vm2, %v474_v30  ;;  %1117 = vmatpush.msk.msra.mxu3 %vm528_vm2, %v474_v30  ;;  %v470_v34 = vld [vmem:[%s1929_s3 + $0x10] sm:$0xff]  ;;  %v1458_v36 = vld [vmem:[%s1928_s2] ss:$0 sm:$0xff] }
  0x16   :  { %127 = vmatpush.msra.mxu0 %v48_v10  ;;  %1113 = vmatpush.msra.mxu2 %v48_v10  ;;  %v468_v37 = vld [vmem:[%s1929_s3] sm:$0xff] }
  0x17   :  { %542 = vmatpush.msra.mxu1 %v473_v31  ;;  %1118 = vmatpush.msra.mxu3 %v473_v31 }
  0x18   :  { %128 = vmatpush.msra.mxu0 %v47_v11  ;;  %1114 = vmatpush.msra.mxu2 %v47_v11 }
  0x19   :  { %543 = vmatpush.msra.mxu1 %v472_v32  ;;  %1119 = vmatpush.msra.mxu3 %v472_v32 }
  0x1a   :  { %129 = vmatpush.msra.mxu0 %v46_v12  ;;  %1115 = vmatpush.msra.mxu2 %v46_v12 }
  0x1b   :  { %544 = vmatpush.msra.mxu1 %v471_v33  ;;  %1120 = vmatpush.msra.mxu3 %v471_v33 }
  0x1c   :  { %130 = vmatpush.msra.mxu0 %v45_v13  ;;  %1116 = vmatpush.msra.mxu2 %v45_v13 }
  0x1d   :  { %1070 = vmatmul.msk.f32.vlgmr.msra.gmra.mxu0 %vm62_vm1, %v29_v14  ;;  %1077 = vmatmul.msk.f32.vlgmr.msra.gmra.mxu2 %vm62_vm1, %v36_v15 }
  0x1e   :  { %545 = vmatpush.msra.mxu1 %v470_v34  ;;  %1121 = vmatpush.msra.mxu3 %v470_v34 }
  0x20   :  { %546 = vmatpush.msra.mxu1 %v469_v35  ;;  %1122 = vmatpush.msra.mxu3 %v469_v35 }
  0x22   :  { %547 = vmatpush.msra.mxu1 %v468_v37  ;;  %1123 = vmatpush.msra.mxu3 %v468_v37 }
  0x25   :  { %1071 = vmatmul.msk.f32.gmra.mxu0 %vm62_vm1, %v30_v16  ;;  %1078 = vmatmul.msk.f32.gmra.mxu2 %vm62_vm1, %v37_v17 }
  0x2d   :  { %1072 = vmatmul.msk.f32.gmra.mxu0 %vm62_vm1, %v31_v18  ;;  %1079 = vmatmul.msk.f32.gmra.mxu2 %vm62_vm1, %v38_v19 }
  0x35   :  { %1073 = vmatmul.msk.f32.gmra.mxu0 %vm62_vm1, %v32_v20  ;;  %1080 = vmatmul.msk.f32.gmra.mxu2 %vm62_vm1, %v39_v21 }
  0x3d   :  { %1074 = vmatmul.msk.f32.gmra.mxu0 %vm62_vm1, %v33_v22  ;;  %1081 = vmatmul.msk.f32.gmra.mxu2 %vm62_vm1, %v40_v23 }
  0x45   :  { %1075 = vmatmul.msk.f32.gmra.mxu0 %vm62_vm1, %v34_v24  ;;  %1082 = vmatmul.msk.f32.gmra.mxu2 %vm62_vm1, %v41_v25 }
  0x4d   :  { %1076 = vmatmul.msk.f32.gmra.mxu0 %vm62_vm1, %v35_v26  ;;  %1083 = vmatmul.msk.f32.gmra.mxu2 %vm62_vm1, %v42_v27 }
  0x55   :  { %1084 = vmatmul.msk.f32.gmra.mxu2 %vm62_vm1, %v43_v28 }
  0x5d   :  { %1085 = vmatmul.msk.f32.gmra.mxu2 %vm62_vm1, %v44_v29 }
  0x9a   :  { %v132_v38 = vpop.f32.mrf.mxu0 }
  0x9b   :  { %v133_v39 = vadd.f32 %v1458_v36, %v132_v38 }
  0x9d   :  { %v228_v40 = vand.u32 2147483647, %v133_v39  ;;  %v180_v13 = vmax.f32 %v133_v39, 0.0  ;;  %vm196_vm5 = vcmp.ne.f32.partialorder %v133_v39, %v133_v39 }
  0x9f   :  { %v244_v41 = vsub.f32 0.0, %v228_v40 }
  0xa0   :  { %v153_v42 = vpop.f32.mrf.mxu2 }
  0xa1   :  { %v260_v43 = vmul.f32 1.442695, %v244_v41  ;;  %v1465_v44 = vadd.f32 %v1458_v36, %v153_v42 }
  0xa2   :  { %v135_v45 = vpop.f32.mrf.mxu0 }
  0xa3   :  { %1131 = vpow2.f32 %v260_v43  ;;  %v1468_v46 = vadd.f32 %v1458_v36, %v135_v45  ;;  %v235_v47 = vand.u32 2147483647, %v1465_v44 }
  0xa5   :  { %v229_v48 = vand.u32 2147483647, %v1468_v46  ;;  %v251_v52 = vsub.f32 0.0, %v235_v47  ;;  %v181_v40 = vmax.f32 %v1468_v46, 0.0  ;;  %vm197_vm7 = vcmp.ne.f32.partialorder %v1468_v46, %v1468_v46 }
  0xa7   :  { %v245_v49 = vsub.f32 0.0, %v229_v48  ;;  %v274_v58 = vmul.f32 1.442695, %v251_v52 }
  0xa8   :  { %v156_v50 = vpop.f32.mrf.mxu2 }
  0xa9   :  { %v1132_v51 = vpop.eup %1131  ;;  %v262_v53 = vmul.f32 1.442695, %v245_v49  ;;  %v1476_v59 = vadd.f32 %v1458_v36, %v156_v50 }
  0xaa   :  { %v138_v54 = vpop.f32.mrf.mxu0  ;;  %v292_v55 = vadd.f32 1.0, %v1132_v51  ;;  %v295_v56 = vmul.f32 -0.5, %v1132_v51  ;;  %v298_v0 = vand.u32 2147483647, %v1132_v51 }
  0xab   :  { %1133 = vpow2.f32 %v262_v53  ;;  %v1473_v57 = vadd.f32 %v1458_v36, %v138_v54  ;;  %v236_v2 = vand.u32 2147483647, %v1476_v59 }
  0xac   :  { %1135 = vlog2.f32 %v292_v55  ;;  %v296_v61 = vadd.f32 1.0, %v295_v56  ;;  %vm299_vm3 = vcmp.lt.f32.partialorder %v298_v0, 0.0004427343 }
  0xad   :  { %v230_v60 = vand.u32 2147483647, %v1473_v57  ;;  %1137 = vpow2.f32 %v274_v58  ;;  %v252_v14 = vsub.f32 0.0, %v236_v2  ;;  %v182_v47 = vmax.f32 %v1473_v57, 0.0 }
  0xae   :  { %v297_v7 = vmul.f32 %v1132_v51, %v296_v61  ;;  %vm198_vm8 = vcmp.ne.f32.partialorder %v1473_v57, %v1473_v57 }
  0xaf   :  { %v246_v62 = vsub.f32 0.0, %v230_v60  ;;  %v276_v27 = vmul.f32 1.442695, %v252_v14 }
  0xb0   :  { %v159_v63 = vpop.f32.mrf.mxu2 }
  0xb1   :  { %v1134_v1 = vpop.eup %1133  ;;  %v264_v3 = vmul.f32 1.442695, %v246_v62  ;;  %v1481_v4 = vadd.f32 %v1458_v36, %v159_v63 }
  0xb2   :  { %v1136_v5 = vpop.eup %1135  ;;  %v141_v6 = vpop.f32.mrf.mxu0  ;;  %v301_v8 = vadd.f32 1.0, %v1134_v1  ;;  %v304_v9 = vmul.f32 -0.5, %v1134_v1  ;;  %v307_v25 = vand.u32 2147483647, %v1134_v1 }
  0xb3   :  { %1139 = vpow2.f32 %v264_v3  ;;  %v237_v10 = vand.u32 2147483647, %v1481_v4  ;;  %v1485_v11 = vadd.f32 %v1458_v36, %v141_v6  ;;  %v294_v12 = vmul.f32 0.6931472, %v1136_v5  ;;  %v1488_v20 = vpop.eup %1137 }
  0xb4   :  { %1141 = vlog2.f32 %v301_v8  ;;  %v305_v19 = vadd.f32 1.0, %v304_v9  ;;  %v355_v35 = vadd.f32 1.0, %v1488_v20  ;;  %vm308_vm6 = vcmp.lt.f32.partialorder %v307_v25, 0.0004427343 }
  0xb5   :  { %v253_v15 = vsub.f32 0.0, %v237_v10  ;;  %v231_v16 = vand.u32 2147483647, %v1485_v11  ;;  %v300_v17 = vsel %vm299_vm3, %v297_v7, %v294_v12  ;;  %v358_v52 = vmul.f32 -0.5, %v1488_v20 }
  0xb6   :  { %v436_v18 = vadd.f32 %v300_v17, %v180_v13  ;;  %v306_v32 = vmul.f32 %v1134_v1, %v305_v19  ;;  %v361_v63 = vand.u32 2147483647, %v1488_v20  ;;  %v189_v9 = vmax.f32 %v1481_v4, 0.0 }
  0xb7   :  { %v278_v21 = vmul.f32 1.442695, %v253_v15  ;;  %v247_v22 = vsub.f32 0.0, %v231_v16  ;;  %vm205_vm10 = vcmp.ne.f32.partialorder %v1481_v4, %v1481_v4  ;;  %v1526_v19 = vadd.f32 1.0, %v358_v52 }
  0xb8   :  { %v162_v23 = vpop.f32.mrf.mxu2  ;;  %v452_v24 = vsel %vm196_vm5, %v133_v39, %v436_v18  ;;  %v183_v18 = vmax.f32 %v1485_v11, 0.0  ;;  %vm199_vm11 = vcmp.ne.f32.partialorder %v1485_v11, %v1485_v11 }
  0xb9   :  { %v1140_v26 = vpop.eup %1139  ;;  %1143 = vpow2.f32 %v278_v21  ;;  %v266_v28 = vmul.f32 1.442695, %v247_v22  ;;  %v1491_v29 = vadd.f32 %v1458_v36, %v162_v23  ;;  %1087 = vmatmul.msk.f32.vlgmr.msra.gmra.mxu1 %vm479_vm4, %v452_v24 }
  0xba   :  { %v1142_v30 = vpop.eup %1141  ;;  %v144_v31 = vpop.f32.mrf.mxu0  ;;  %v310_v33 = vadd.f32 1.0, %v1140_v26  ;;  %v313_v34 = vmul.f32 -0.5, %v1140_v26  ;;  %v316_v55 = vand.u32 2147483647, %v1140_v26 }
  0xbb   :  { %1145 = vpow2.f32 %v266_v28  ;;  %v238_v37 = vand.u32 2147483647, %v1491_v29  ;;  %v1497_v38 = vadd.f32 %v1458_v36, %v144_v31  ;;  %v303_v39 = vmul.f32 0.6931472, %v1142_v30 }
  0xbc   :  { %1147 = vlog2.f32 %v310_v33  ;;  %v314_v48 = vadd.f32 1.0, %v313_v34  ;;  %vm317_vm9 = vcmp.lt.f32.partialorder %v316_v55, 0.0004427343  ;;  %v190_v25 = vmax.f32 %v1491_v29, 0.0 }
  0xbd   :  { %v254_v41 = vsub.f32 0.0, %v238_v37  ;;  %v232_v42 = vand.u32 2147483647, %v1497_v38  ;;  %v309_v43 = vsel %vm308_vm6, %v306_v32, %v303_v39  ;;  %1149 = vpow2.f32 %v276_v27 }
  0xbe   :  { %v437_v45 = vadd.f32 %v309_v43, %v181_v40  ;;  %1151 = vlog2.f32 %v355_v35  ;;  %v315_v2 = vmul.f32 %v1140_v26, %v314_v48  ;;  %vm206_vm0 = vcmp.ne.f32.partialorder %v1491_v29, %v1491_v29 }
  0xbf   :  { %v1144_v49 = vpop.eup %1143  ;;  %v280_v50 = vmul.f32 1.442695, %v254_v41  ;;  %v248_v51 = vsub.f32 0.0, %v232_v42  ;;  %vm200_vm1 = vcmp.ne.f32.partialorder %v1497_v38, %v1497_v38 }
  0xc0   :  { %v165_v53 = vpop.f32.mrf.mxu2  ;;  %v453_v54 = vsel %vm197_vm7, %v1468_v46, %v437_v45  ;;  %v373_v56 = vadd.f32 1.0, %v1144_v49  ;;  %v376_v58 = vmul.f32 -0.5, %v1144_v49  ;;  %v379_v17 = vand.u32 2147483647, %v1144_v49 }
  0xc1   :  { %v1146_v60 = vpop.eup %1145  ;;  %1153 = vpow2.f32 %v280_v50  ;;  %v268_v61 = vmul.f32 1.442695, %v248_v51  ;;  %v1509_v62 = vadd.f32 %v1458_v36, %v165_v53  ;;  %1088 = vmatmul.msk.f32.gmra.mxu1 %vm479_vm4, %v453_v54 }
  0xc2   :  { %v1148_v0 = vpop.eup %1147  ;;  %v147_v1 = vpop.f32.mrf.mxu0  ;;  %1155 = vlog2.f32 %v373_v56  ;;  %v377_v3 = vadd.f32 1.0, %v376_v58  ;;  %v319_v5 = vadd.f32 1.0, %v1146_v60  ;;  %v322_v10 = vmul.f32 -0.5, %v1146_v60 }
  0xc3   :  { %1157 = vpow2.f32 %v268_v61  ;;  %v239_v46 = vand.u32 2147483647, %v1509_v62  ;;  %v1515_v6 = vadd.f32 %v1458_v36, %v147_v1  ;;  %v312_v7 = vmul.f32 0.6931472, %v1148_v0  ;;  %v1517_v8 = vpop.eup %1149 }
  0xc4   :  { %1159 = vlog2.f32 %v319_v5  ;;  %v1520_v12 = vpop.eup %1151  ;;  %v378_v24 = vmul.f32 %v1144_v49, %v377_v3  ;;  %v323_v30 = vadd.f32 1.0, %v322_v10  ;;  %v325_v31 = vand.u32 2147483647, %v1146_v60 }
  0xc5   :  { %v255_v13 = vsub.f32 0.0, %v239_v46  ;;  %v233_v14 = vand.u32 2147483647, %v1515_v6  ;;  %v318_v15 = vsel %vm317_vm9, %v315_v2, %v312_v7  ;;  %vm380_vm12 = vcmp.lt.f32.partialorder %v379_v17, 0.0004427343 }
  0xc6   :  { %v438_v16 = vadd.f32 %v318_v15, %v182_v47  ;;  %v324_v49 = vmul.f32 %v1146_v60, %v323_v30  ;;  %vm326_vm13 = vcmp.lt.f32.partialorder %v325_v31, 0.0004427343  ;;  %v184_v1 = vmax.f32 %v1497_v38, 0.0 }
  0xc7   :  { %v1154_v21 = vpop.eup %1153  ;;  %v282_v22 = vmul.f32 1.442695, %v255_v13  ;;  %v249_v23 = vsub.f32 0.0, %v233_v14  ;;  %vm207_vm2 = vcmp.ne.f32.partialorder %v1509_v62, %v1509_v62  ;;  %vm201_vm6 = vcmp.ne.f32.partialorder %v1515_v6, %v1515_v6 }
  0xc8   :  { %v1156_v26 = vpop.eup %1155  ;;  %v168_v27 = vpop.f32.mrf.mxu2  ;;  %v454_v28 = vsel %vm198_vm8, %v1473_v57, %v438_v16  ;;  %v382_v32 = vadd.f32 1.0, %v1154_v21  ;;  %v385_v57 = vmul.f32 -0.5, %v1154_v21  ;;  %v388_v56 = vand.u32 2147483647, %v1154_v21 }
  0xc9   :  { %v1158_v33 = vpop.eup %1157  ;;  %1161 = vpow2.f32 %v282_v22  ;;  %v270_v34 = vmul.f32 1.442695, %v249_v23  ;;  %v1536_v35 = vadd.f32 %v1458_v36, %v168_v27  ;;  %1089 = vmatmul.msk.f32.gmra.mxu1 %vm479_vm4, %v454_v28  ;;  %v375_v37 = vmul.f32 0.6931472, %v1156_v26 }
  0xca   :  { %v1160_v39 = vpop.eup %1159  ;;  %v150_v40 = vpop.f32.mrf.mxu0  ;;  %1163 = vlog2.f32 %v382_v32  ;;  %v328_v41 = vadd.f32 1.0, %v1158_v33  ;;  %v331_v52 = vmul.f32 -0.5, %v1158_v33  ;;  %v386_v55 = vadd.f32 1.0, %v385_v57 }
  0xcb   :  { %1165 = vpow2.f32 %v270_v34  ;;  %v240_v42 = vand.u32 2147483647, %v1536_v35  ;;  %v1541_v43 = vadd.f32 %v1458_v36, %v150_v40  ;;  %v381_v45 = vsel %vm380_vm12, %v378_v24, %v375_v37 }
  0xcc   :  { %v445_v47 = vadd.f32 %v381_v45, %v189_v9  ;;  %v321_v48 = vmul.f32 0.6931472, %v1160_v39  ;;  %1167 = vlog2.f32 %v328_v41  ;;  %v332_v5 = vadd.f32 1.0, %v331_v52 }
  0xcd   :  { %v256_v50 = vsub.f32 0.0, %v240_v42  ;;  %v234_v51 = vand.u32 2147483647, %v1541_v43  ;;  %v334_v46 = vand.u32 2147483647, %v1158_v33  ;;  %v387_v16 = vmul.f32 %v1154_v21, %v386_v55 }
  0xce   :  { %v461_v53 = vsel %vm205_vm10, %v1481_v4, %v445_v47  ;;  %v327_v54 = vsel %vm326_vm13, %v324_v49, %v321_v48  ;;  %vm389_vm14 = vcmp.lt.f32.partialorder %v388_v56, 0.0004427343  ;;  %v333_v27 = vmul.f32 %v1158_v33, %v332_v5 }
  0xcf   :  { %v1162_v58 = vpop.eup %1161  ;;  %v284_v61 = vmul.f32 1.442695, %v256_v50  ;;  %v250_v0 = vsub.f32 0.0, %v234_v51  ;;  %1096 = vmatmul.msk.f32.vlgmr.msra.gmra.mxu3 %vm479_vm4, %v461_v53  ;;  %v439_v60 = vadd.f32 %v327_v54, %v183_v18  ;;  %vm335_vm15 = vcmp.lt.f32.partialorder %v334_v46, 0.0004427343 }
  0xd0   :  { %v1164_v2 = vpop.eup %1163  ;;  %v171_v3 = vpop.f32.mrf.mxu2  ;;  %v391_v7 = vadd.f32 1.0, %v1162_v58  ;;  %v394_v9 = vmul.f32 -0.5, %v1162_v58  ;;  %v397_v31 = vand.u32 2147483647, %v1162_v58  ;;  %v191_v50 = vmax.f32 %v1509_v62, 0.0 }
  0xd1   :  { %v1166_v10 = vpop.eup %1165  ;;  %1169 = vpow2.f32 %v284_v61  ;;  %v272_v4 = vmul.f32 1.442695, %v250_v0  ;;  %v1551_v13 = vadd.f32 %v1458_v36, %v171_v3  ;;  %v455_v14 = vsel %vm199_vm11, %v1485_v11, %v439_v60 }
  0xd2   :  { %1090 = vmatmul.msk.f32.gmra.mxu1 %vm479_vm4, %v455_v14  ;;  %v384_v15 = vmul.f32 0.6931472, %v1164_v2  ;;  %1171 = vlog2.f32 %v391_v7  ;;  %v1168_v17 = vpop.eup %1167  ;;  %v395_v22 = vadd.f32 1.0, %v394_v9  ;;  %v337_v23 = vadd.f32 1.0, %v1166_v10 }
  0xd3   :  { %1173 = vpow2.f32 %v272_v4  ;;  %v241_v18 = vand.u32 2147483647, %v1551_v13  ;;  %v330_v26 = vmul.f32 0.6931472, %v1168_v17  ;;  %v340_v28 = vmul.f32 -0.5, %v1166_v10 }
  0xd4   :  { %v390_v24 = vsel %vm389_vm14, %v387_v16, %v384_v15  ;;  %1175 = vlog2.f32 %v337_v23  ;;  %v396_v39 = vmul.f32 %v1162_v58, %v395_v22  ;;  %v343_v41 = vand.u32 2147483647, %v1166_v10 }
  0xd5   :  { %v257_v30 = vsub.f32 0.0, %v241_v18  ;;  %v446_v11 = vadd.f32 %v390_v24, %v190_v25  ;;  %v336_v21 = vsel %vm335_vm15, %v333_v27, %v330_v26  ;;  %v341_v57 = vadd.f32 1.0, %v340_v28 }
  0xd6   :  { %v440_v33 = vadd.f32 %v336_v21, %v184_v1  ;;  %vm398_vm3 = vcmp.lt.f32.partialorder %v397_v31, 0.0004427343  ;;  %v185_v60 = vmax.f32 %v1515_v6, 0.0  ;;  %vm344_vm5 = vcmp.lt.f32.partialorder %v343_v41, 0.0004427343 }
  0xd7   :  { %v1170_v32 = vpop.eup %1169  ;;  %v286_v34 = vmul.f32 1.442695, %v257_v30  ;;  %v462_v37 = vsel %vm206_vm0, %v1491_v29, %v446_v11  ;;  %v342_v61 = vmul.f32 %v1166_v10, %v341_v57  ;;  %v364_v5 = vadd.f32 1.0, %v1517_v8 }
  0xd8   :  { %v1172_v40 = vpop.eup %1171  ;;  %1097 = vmatmul.msk.f32.gmra.mxu3 %vm479_vm4, %v462_v37  ;;  %v174_v25 = vpop.f32.mrf.mxu2  ;;  %v400_v42 = vadd.f32 1.0, %v1170_v32  ;;  %v403_v45 = vmul.f32 -0.5, %v1170_v32  ;;  %v456_v29 = vsel %vm200_vm1, %v1497_v38, %v440_v33  ;;  %v406_v3 = vand.u32 2147483647, %v1170_v32 }
  0xd9   :  { %v1174_v47 = vpop.eup %1173  ;;  %1177 = vpow2.f32 %v286_v34  ;;  %v1568_v48 = vadd.f32 %v1458_v36, %v174_v25  ;;  %v393_v49 = vmul.f32 0.6931472, %v1172_v40  ;;  %v192_v24 = vmax.f32 %v1536_v35, 0.0 }
  0xda   :  { %1091 = vmatmul.msk.f32.gmra.mxu1 %vm479_vm4, %v456_v29  ;;  %1179 = vlog2.f32 %v400_v42  ;;  %v1176_v51 = vpop.eup %1175  ;;  %v404_v54 = vadd.f32 1.0, %v403_v45  ;;  %v346_v55 = vadd.f32 1.0, %v1174_v47  ;;  %v349_v38 = vmul.f32 -0.5, %v1174_v47 }
  0xdb   :  { %v242_v52 = vand.u32 2147483647, %v1568_v48  ;;  %v399_v53 = vsel %vm398_vm3, %v396_v39, %v393_v49  ;;  %v339_v58 = vmul.f32 0.6931472, %v1176_v51  ;;  %v352_v16 = vand.u32 2147483647, %v1174_v47 }
  0xdc   :  { %v447_v56 = vadd.f32 %v399_v53, %v191_v50  ;;  %1181 = vlog2.f32 %v346_v55  ;;  %v405_v10 = vmul.f32 %v1170_v32, %v404_v54  ;;  %v350_v15 = vadd.f32 1.0, %v349_v38 }
  0xdd   :  { %v258_v0 = vsub.f32 0.0, %v242_v52  ;;  %v345_v2 = vsel %vm344_vm5, %v342_v61, %v339_v58  ;;  %vm407_vm7 = vcmp.lt.f32.partialorder %v406_v3, 0.0004427343  ;;  %v357_v26 = vmul.f32 0.6931472, %v1520_v12 }
  0xde   :  { %v463_v1 = vsel %vm207_vm2, %v1509_v62, %v447_v56  ;;  %v441_v9 = vadd.f32 %v345_v2, %v185_v60  ;;  %vm208_vm8 = vcmp.ne.f32.partialorder %v1536_v35, %v1536_v35  ;;  %v351_v21 = vmul.f32 %v1174_v47, %v350_v15 }
  0xdf   :  { %v1178_v46 = vpop.eup %1177  ;;  %v288_v7 = vmul.f32 1.442695, %v258_v0  ;;  %v186_v34 = vmax.f32 %v1541_v43, 0.0  ;;  %vm353_vm9 = vcmp.lt.f32.partialorder %v352_v16, 0.0004427343  ;;  %vm202_vm11 = vcmp.ne.f32.partialorder %v1541_v43, %v1541_v43 }
  0xe0   :  { %v1180_v4 = vpop.eup %1179  ;;  %1098 = vmatmul.msk.f32.gmra.mxu3 %vm479_vm4, %v463_v1  ;;  %v177_v14 = vpop.f32.mrf.mxu2  ;;  %v409_v17 = vadd.f32 1.0, %v1178_v46  ;;  %v412_v18 = vmul.f32 -0.5, %v1178_v46  ;;  %v457_v22 = vsel %vm201_vm6, %v1515_v6, %v441_v9  ;;  %v415_v33 = vand.u32 2147483647, %v1178_v46 }
  0xe1   :  { %1183 = vpow2.f32 %v288_v7  ;;  %v1589_v62 = vadd.f32 %v1458_v36, %v177_v14  ;;  %v402_v23 = vmul.f32 0.6931472, %v1180_v4  ;;  %v360_v36 = vmul.f32 %v1488_v20, %v1526_v19 }
  0xe2   :  { %1092 = vmatmul.msk.f32.gmra.mxu1 %vm479_vm4, %v457_v22  ;;  %1185 = vlog2.f32 %v409_v17  ;;  %v1182_v27 = vpop.eup %1181  ;;  %v413_v31 = vadd.f32 1.0, %v412_v18  ;;  %vm1604_vm10 = vcmp.lt.f32.partialorder %v361_v63, 0.0004427343  ;;  %v367_v20 = vmul.f32 -0.5, %v1517_v8 }
  0xe3   :  { %v243_v28 = vand.u32 2147483647, %v1589_v62  ;;  %v408_v30 = vsel %vm407_vm7, %v405_v10, %v402_v23  ;;  %v348_v11 = vmul.f32 0.6931472, %v1182_v27  ;;  %1187 = vlog2.f32 %v364_v5 }
  0xe4   :  { %v448_v6 = vadd.f32 %v408_v30, %v192_v24  ;;  %v363_v57 = vsel %vm1604_vm10, %v360_v36, %v357_v26  ;;  %v193_v29 = vmax.f32 %v1551_v13, 0.0  ;;  %vm416_vm12 = vcmp.lt.f32.partialorder %v415_v33, 0.0004427343 }
  0xe5   :  { %v259_v32 = vsub.f32 0.0, %v243_v28  ;;  %v354_v37 = vsel %vm353_vm9, %v351_v21, %v348_v11  ;;  %v187_v49 = vmax.f32 %v1465_v44, 0.0  ;;  %v368_v54 = vadd.f32 1.0, %v367_v20 }
  0xe6   :  { %v464_v12 = vsel %vm208_vm8, %v1536_v35, %v448_v6  ;;  %v442_v25 = vadd.f32 %v354_v37, %v186_v34  ;;  %v414_v35 = vmul.f32 %v1178_v46, %v413_v31  ;;  %vm209_vm13 = vcmp.ne.f32.partialorder %v1551_v13, %v1551_v13 }
  0xe7   :  { %v1184_v19 = vpop.eup %1183  ;;  %v290_v40 = vmul.f32 1.442695, %v259_v32  ;;  %v443_v53 = vadd.f32 %v363_v57, %v187_v49  ;;  %vm203_vm14 = vcmp.ne.f32.partialorder %v1465_v44, %v1465_v44  ;;  %v369_v1 = vmul.f32 %v1517_v8, %v368_v54 }
  0xe8   :  { %v1186_v41 = vpop.eup %1185  ;;  %1099 = vmatmul.msk.f32.gmra.mxu3 %vm479_vm4, %v464_v12  ;;  %v418_v42 = vadd.f32 1.0, %v1184_v19  ;;  %v458_v63 = vsel %vm202_vm11, %v1541_v43, %v442_v25  ;;  %v421_v47 = vmul.f32 -0.5, %v1184_v19  ;;  %v370_v43 = vand.u32 2147483647, %v1517_v8 }
  0xe9   :  { %1189 = vpow2.f32 %v290_v40  ;;  %v411_v45 = vmul.f32 0.6931472, %v1186_v41  ;;  %v1188_v50 = vpop.eup %1187  ;;  %v424_v58 = vand.u32 2147483647, %v1184_v19  ;;  %v459_v60 = vsel %vm203_vm14, %v1465_v44, %v443_v53 }
  0xea   :  { %1093 = vmatmul.msk.f32.gmra.mxu1 %vm479_vm4, %v458_v63  ;;  %1191 = vlog2.f32 %v418_v42  ;;  %v422_v55 = vadd.f32 1.0, %v421_v47  ;;  %v366_v61 = vmul.f32 0.6931472, %v1188_v50  ;;  %vm371_vm15 = vcmp.lt.f32.partialorder %v370_v43, 0.0004427343 }
  0xeb   :  { %v417_v51 = vsel %vm416_vm12, %v414_v35, %v411_v45  ;;  %vm425_vm0 = vcmp.lt.f32.partialorder %v424_v58, 0.0004427343  ;;  %v188_v10 = vmax.f32 %v1476_v59, 0.0  ;;  %vm210_vm1 = vcmp.ne.f32.partialorder %v1568_v48, %v1568_v48 }
  0xec   :  { %v449_v52 = vadd.f32 %v417_v51, %v193_v29  ;;  %v423_v5 = vmul.f32 %v1184_v19, %v422_v55  ;;  %v372_v7 = vsel %vm371_vm15, %v369_v1, %v366_v61  ;;  %vm204_vm2 = vcmp.ne.f32.partialorder %v1476_v59, %v1476_v59 }
  0xed   :  { %v444_v44 = vadd.f32 %v372_v7, %v188_v10  ;;  %v195_v23 = vmax.f32 %v1589_v62, 0.0  ;;  %vm211_vm5 = vcmp.ne.f32.partialorder %v1589_v62, %v1589_v62 }
  0xee   :  { %v465_v56 = vsel %vm209_vm13, %v1551_v13, %v449_v52  ;;  %v194_v13 = vmax.f32 %v1568_v48, 0.0  ;;  %v1663_v52 = vld [vmem:[%s1931_s5] ss:$0 sm:$0xff]  ;;  %s1290_s5 = smov [#allocation3]  }
  0xef   :  { %v1190_v38 = vpop.eup %1189  ;;  %v460_v17 = vsel %vm204_vm2, %v1476_v59, %v444_v44  ;;  %v1646_v59 = vld [vmem:[%s1930_s4] ss:$0 sm:$0xff]  ;;  %s1058_s26 = sshll.u32 %s1290_s5, 4  ;;  %s1059_s26 = int_to_ptr.vmem [resolvable:$true] %s1058_s26 }
  0xf0   :  { %v1192_v0 = vpop.eup %1191  ;;  %1100 = vmatmul.msk.f32.gmra.mxu3 %vm479_vm4, %v465_v56  ;;  %v427_v2 = vadd.f32 1.0, %v1190_v38  ;;  %v430_v46 = vmul.f32 -0.5, %v1190_v38  ;;  %v433_v15 = vand.u32 2147483647, %v1190_v38 }
  0xf1   :  { %v420_v3 = vmul.f32 0.6931472, %v1192_v0 }
  0xf2   :  { %1094 = vmatmul.msk.f32.gmra.mxu1 %vm479_vm4, %v459_v60  ;;  %1193 = vlog2.f32 %v427_v2  ;;  %v431_v8 = vadd.f32 1.0, %v430_v46  ;;  %vm434_vm3 = vcmp.lt.f32.partialorder %v433_v15, 0.0004427343 }
  0xf3   :  { %v426_v9 = vsel %vm425_vm0, %v423_v5, %v420_v3 }
  0xf4   :  { %v450_v4 = vadd.f32 %v426_v9, %v194_v13  ;;  %v432_v22 = vmul.f32 %v1190_v38, %v431_v8 }
  0xf6   :  { %v466_v14 = vsel %vm210_vm1, %v1568_v48, %v450_v4 }
  0xf8   :  { %v1194_v16 = vpop.eup %1193  ;;  %1101 = vmatmul.msk.f32.gmra.mxu3 %vm479_vm4, %v466_v14 }
  0xf9   :  { %v429_v18 = vmul.f32 0.6931472, %v1194_v16 }
  0xfa   :  { %1095 = vmatmul.msk.f32.gmra.mxu1 %vm479_vm4, %v460_v17 }
  0xfb   :  { %v435_v24 = vsel %vm434_vm3, %v432_v22, %v429_v18 }
  0xfc   :  { %v451_v26 = vadd.f32 %v435_v24, %v195_v23 }
  0xfe   :  { %v467_v48 = vsel %vm211_vm5, %v1589_v62, %v451_v26 }
 0x100   :  { %1102 = vmatmul.msk.f32.gmra.mxu3 %vm479_vm4, %v467_v48 }
 0x136   :  { %v549_v27 = vpop.f32.mrf.mxu1 }
 0x137   :  { %v550_v28 = vadd.f32 %v1646_v59, %v549_v27 }
 0x139   :  { %v645_v30 = vand.u32 2147483647, %v550_v28  ;;  %v597_v49 = vmax.f32 %v550_v28, 0.0  ;;  %vm613_vm7 = vcmp.ne.f32.partialorder %v550_v28, %v550_v28 }
 0x13b   :  { %v661_v36 = vsub.f32 0.0, %v645_v30 }
 0x13d   :  { %v677_v6 = vmul.f32 1.442695, %v661_v36 }
 0x13e   :  { %v552_v11 = vpop.f32.mrf.mxu1 }
 0x13f   :  { %1195 = vpow2.f32 %v677_v6  ;;  %v1650_v21 = vadd.f32 %v1646_v59, %v552_v11 }
 0x141   :  { %v646_v62 = vand.u32 2147483647, %v1650_v21  ;;  %v598_v9 = vmax.f32 %v1650_v21, 0.0  ;;  %vm614_vm9 = vcmp.ne.f32.partialorder %v1650_v21, %v1650_v21 }
 0x143   :  { %v662_v31 = vsub.f32 0.0, %v646_v62 }
 0x145   :  { %v1196_v32 = vpop.eup %1195  ;;  %v679_v34 = vmul.f32 1.442695, %v662_v31 }
 0x146   :  { %v555_v12 = vpop.f32.mrf.mxu1  ;;  %v709_v37 = vadd.f32 1.0, %v1196_v32  ;;  %v712_v39 = vmul.f32 -0.5, %v1196_v32  ;;  %v715_v57 = vand.u32 2147483647, %v1196_v32 }
 0x147   :  { %1197 = vpow2.f32 %v679_v34  ;;  %v1654_v33 = vadd.f32 %v1646_v59, %v555_v12 }
 0x148   :  { %1199 = vlog2.f32 %v709_v37  ;;  %v713_v25 = vadd.f32 1.0, %v712_v39  ;;  %vm716_vm6 = vcmp.lt.f32.partialorder %v715_v57, 0.0004427343 }
 0x149   :  { %v647_v19 = vand.u32 2147483647, %v1654_v33  ;;  %v599_v34 = vmax.f32 %v1654_v33, 0.0  ;;  %vm615_vm11 = vcmp.ne.f32.partialorder %v1654_v33, %v1654_v33 }
 0x14a   :  { %v714_v47 = vmul.f32 %v1196_v32, %v713_v25 }
 0x14b   :  { %v663_v40 = vsub.f32 0.0, %v647_v19 }
 0x14d   :  { %v1198_v41 = vpop.eup %1197  ;;  %v681_v35 = vmul.f32 1.442695, %v663_v40 }
 0x14e   :  { %v1200_v42 = vpop.eup %1199  ;;  %v718_v20 = vadd.f32 1.0, %v1198_v41  ;;  %v721_v29 = vmul.f32 -0.5, %v1198_v41  ;;  %v724_v61 = vand.u32 2147483647, %v1198_v41 }
 0x14f   :  { %1201 = vpow2.f32 %v681_v35  ;;  %v558_v63 = vpop.f32.mrf.mxu1  ;;  %v711_v45 = vmul.f32 0.6931472, %v1200_v42 }
 0x150   :  { %v1658_v50 = vadd.f32 %v1646_v59, %v558_v63  ;;  %1203 = vlog2.f32 %v718_v20  ;;  %v722_v43 = vadd.f32 1.0, %v721_v29  ;;  %vm725_vm8 = vcmp.lt.f32.partialorder %v724_v61, 0.0004427343 }
 0x151   :  { %v717_v51 = vsel %vm716_vm6, %v714_v47, %v711_v45 }
 0x152   :  { %v648_v53 = vand.u32 2147483647, %v1658_v50  ;;  %v576_v54 = vpop.f32.mrf.mxu3  ;;  %v853_v55 = vadd.f32 %v717_v51, %v597_v49  ;;  %v723_v13 = vmul.f32 %v1198_v41, %v722_v43  ;;  %v600_v47 = vmax.f32 %v1658_v50, 0.0 }
 0x153   :  { %v1674_v14 = vadd.f32 %v1646_v59, %v576_v54  ;;  %vm616_vm13 = vcmp.ne.f32.partialorder %v1658_v50, %v1658_v50 }
 0x154   :  { %v664_v56 = vsub.f32 0.0, %v648_v53  ;;  %v869_v58 = vsel %vm613_vm7, %v550_v28, %v853_v55 }
 0x155   :  { %v1202_v38 = vpop.eup %1201  ;;  %v889_v0 = vmul.f32 %v1663_v52, %v869_v58  ;;  %v654_v30 = vand.u32 2147483647, %v1674_v14  ;;  %v606_v53 = vmax.f32 %v1674_v14, 0.0  ;;  %vm622_vm6 = vcmp.ne.f32.partialorder %v1674_v14, %v1674_v14 }
 0x156   :  { %v1204_v60 = vpop.eup %1203  ;;  %v683_v1 = vmul.f32 1.442695, %v664_v56  ;;  %v727_v2 = vadd.f32 1.0, %v1202_v38  ;;  %v730_v7 = vmul.f32 -0.5, %v1202_v38  ;;  %v733_v24 = vand.u32 2147483647, %v1202_v38 }
 0x157   :  { %v561_v3 = vpop.f32.mrf.mxu1  ;;  %v905_v5 = vsel %vm479_vm4, %v889_v0, 0.0  ;;  %v720_v46 = vmul.f32 0.6931472, %v1204_v60  ;;  %v670_v40 = vsub.f32 0.0, %v654_v30 }
 0x158   :  { %1205 = vpow2.f32 %v683_v1  ;;  %v1670_v10 = vadd.f32 %v1646_v59, %v561_v3  ;;  %906 = vadd.xlane.f32.xlu0 %v905_v5  ;;  %v731_v16 = vadd.f32 1.0, %v730_v7  ;;  %vm734_vm10 = vcmp.lt.f32.partialorder %v733_v24, 0.0004427343 }
 0x159   :  { %v726_v4 = vsel %vm725_vm8, %v723_v13, %v720_v46  ;;  %1207 = vlog2.f32 %v727_v2  ;;  %v695_v54 = vmul.f32 1.442695, %v670_v40 }
 0x15a   :  { %v649_v44 = vand.u32 2147483647, %v1670_v10  ;;  %v854_v8 = vadd.f32 %v726_v4, %v598_v9  ;;  %v732_v11 = vmul.f32 %v1202_v38, %v731_v16  ;;  %v601_v46 = vmax.f32 %v1670_v10, 0.0 }
 0x15b   :  { %v579_v15 = vpop.f32.mrf.mxu3  ;;  %vm617_vm14 = vcmp.ne.f32.partialorder %v1670_v10, %v1670_v10 }
 0x15c   :  { %v665_v17 = vsub.f32 0.0, %v649_v44  ;;  %v1679_v18 = vadd.f32 %v1646_v59, %v579_v15  ;;  %v870_v22 = vsel %vm614_vm9, %v1650_v21, %v854_v8 }
 0x15d   :  { %v890_v23 = vmul.f32 %v1663_v52, %v870_v22 }
 0x15e   :  { %v1206_v26 = vpop.eup %1205  ;;  %v685_v48 = vmul.f32 1.442695, %v665_v17  ;;  %v655_v27 = vand.u32 2147483647, %v1679_v18  ;;  %v607_v16 = vmax.f32 %v1679_v18, 0.0  ;;  %vm623_vm0 = vcmp.ne.f32.partialorder %v1679_v18, %v1679_v18 }
 0x15f   :  { %v1208_v28 = vpop.eup %1207  ;;  %v564_v36 = vpop.f32.mrf.mxu1  ;;  %v908_v6 = vsel %vm479_vm4, %v890_v23, 0.0  ;;  %v736_v62 = vadd.f32 1.0, %v1206_v26  ;;  %v739_v12 = vmul.f32 -0.5, %v1206_v26  ;;  %v742_v35 = vand.u32 2147483647, %v1206_v26 }
 0x160   :  { %1209 = vpow2.f32 %v685_v48  ;;  %v671_v31 = vsub.f32 0.0, %v655_v27  ;;  %v1687_v32 = vadd.f32 %v1646_v59, %v564_v36  ;;  %909 = vadd.xlane.f32.xlu0 %v908_v6  ;;  %v729_v21 = vmul.f32 0.6931472, %v1208_v28 }
 0x161   :  { %1211 = vlog2.f32 %v736_v62  ;;  %v740_v63 = vadd.f32 1.0, %v739_v12  ;;  %vm1704_vm12 = vcmp.lt.f32.partialorder %v742_v35, 0.0004427343 }
 0x162   :  { %v697_v37 = vmul.f32 1.442695, %v671_v31  ;;  %v650_v39 = vand.u32 2147483647, %v1687_v32  ;;  %v735_v19 = vsel %vm734_vm10, %v732_v11, %v729_v21  ;;  %vm618_vm3 = vcmp.ne.f32.partialorder %v1687_v32, %v1687_v32 }
 0x163   :  { %v582_v25 = vpop.f32.mrf.mxu3  ;;  %v855_v57 = vadd.f32 %v735_v19, %v599_v34  ;;  %v741_v60 = vmul.f32 %v1206_v26, %v740_v63 }
 0x164   :  { %1213 = vpow2.f32 %v697_v37  ;;  %v666_v41 = vsub.f32 0.0, %v650_v39  ;;  %v1694_v42 = vadd.f32 %v1646_v59, %v582_v25  ;;  %v602_v39 = vmax.f32 %v1687_v32, 0.0 }
 0x165   :  { %v871_v20 = vsel %vm615_vm11, %v1654_v33, %v855_v57 }
 0x166   :  { %v1210_v45 = vpop.eup %1209  ;;  %v687_v29 = vmul.f32 1.442695, %v666_v41  ;;  %v891_v49 = vmul.f32 %v1663_v52, %v871_v20  ;;  %v656_v38 = vand.u32 2147483647, %v1694_v42  ;;  %v608_v57 = vmax.f32 %v1694_v42, 0.0 }
 0x167   :  { %v1212_v51 = vpop.eup %1211  ;;  %v567_v55 = vpop.f32.mrf.mxu1  ;;  %v745_v43 = vadd.f32 1.0, %v1210_v45  ;;  %v748_v56 = vmul.f32 -0.5, %v1210_v45  ;;  %v751_v5 = vand.u32 2147483647, %v1210_v45 }
 0x168   :  { %1215 = vpow2.f32 %v687_v29  ;;  %v1701_v58 = vadd.f32 %v1646_v59, %v567_v55  ;;  %v911_v33 = vsel %vm479_vm4, %v891_v49, 0.0  ;;  %v738_v0 = vmul.f32 0.6931472, %v1212_v51 }
 0x169   :  { %912 = vadd.xlane.f32.xlu1 %v911_v33  ;;  %1217 = vlog2.f32 %v745_v43  ;;  %v749_v3 = vadd.f32 1.0, %v748_v56  ;;  %v672_v17 = vsub.f32 0.0, %v656_v38  ;;  %vm1725_vm15 = vcmp.lt.f32.partialorder %v751_v5, 0.0004427343 }
 0x16a   :  { %v1214_v1 = vpop.eup %1213  ;;  %v651_v2 = vand.u32 2147483647, %v1701_v58  ;;  %v744_v7 = vsel %vm1704_vm12, %v741_v60, %v738_v0  ;;  %1219 = vpow2.f32 %v695_v54  ;;  %vm619_vm5 = vcmp.ne.f32.partialorder %v1701_v58, %v1701_v58 }
 0x16b   :  { %v585_v13 = vpop.f32.mrf.mxu3  ;;  %v799_v9 = vadd.f32 1.0, %v1214_v1  ;;  %v802_v4 = vmul.f32 -0.5, %v1214_v1  ;;  %v856_v15 = vadd.f32 %v744_v7, %v600_v47  ;;  %v750_v26 = vmul.f32 %v1210_v45, %v749_v3 }
 0x16c   :  { %v667_v44 = vsub.f32 0.0, %v651_v2  ;;  %v1716_v8 = vadd.f32 %v1646_v59, %v585_v13  ;;  %v805_v6 = vand.u32 2147483647, %v1214_v1  ;;  %v699_v41 = vmul.f32 1.442695, %v672_v17 }
 0x16d   :  { %1221 = vlog2.f32 %v799_v9  ;;  %v872_v24 = vsel %vm616_vm13, %v1658_v50, %v856_v15  ;;  %v803_v36 = vadd.f32 1.0, %v802_v4 }
 0x16e   :  { %v1216_v22 = vpop.eup %1215  ;;  %v689_v23 = vmul.f32 1.442695, %v667_v44  ;;  %v892_v30 = vmul.f32 %v1663_v52, %v872_v24  ;;  %v657_v62 = vand.u32 2147483647, %v1716_v8  ;;  %vm1751_vm1 = vcmp.lt.f32.partialorder %v805_v6, 0.0004427343 }
 0x16f   :  { %v1218_v27 = vpop.eup %1217  ;;  %v570_v28 = vpop.f32.mrf.mxu1  ;;  %v754_v11 = vadd.f32 1.0, %v1216_v22  ;;  %v757_v34 = vmul.f32 -0.5, %v1216_v22  ;;  %v760_v12 = vand.u32 2147483647, %v1216_v22  ;;  %v804_v49 = vmul.f32 %v1214_v1, %v803_v36 }
 0x170   :  { %1223 = vpow2.f32 %v689_v23  ;;  %v1732_v31 = vadd.f32 %v1646_v59, %v570_v28  ;;  %v747_v21 = vmul.f32 0.6931472, %v1218_v27  ;;  %v914_v50 = vsel %vm479_vm4, %v892_v30, 0.0  ;;  %v1735_v37 = vpop.eup %1219 }
 0x171   :  { %1225 = vlog2.f32 %v754_v11  ;;  %915 = vadd.xlane.f32.xlu1 %v914_v50  ;;  %v758_v63 = vadd.f32 1.0, %v757_v34  ;;  %v673_v51 = vsub.f32 0.0, %v657_v62  ;;  %vm1755_vm2 = vcmp.lt.f32.partialorder %v760_v12, 0.0004427343 }
 0x172   :  { %v652_v19 = vand.u32 2147483647, %v1732_v31  ;;  %v753_v40 = vsel %vm1725_vm15, %v750_v26, %v747_v21  ;;  %v790_v0 = vadd.f32 1.0, %v1735_v37  ;;  %v603_v23 = vmax.f32 %v1701_v58, 0.0 }
 0x173   :  { %v1222_v25 = vpop.eup %1221  ;;  %v588_v35 = vpop.f32.mrf.mxu3  ;;  %v857_v20 = vadd.f32 %v753_v40, %v601_v46  ;;  %v759_v2 = vmul.f32 %v1216_v22, %v758_v63  ;;  %v793_v22 = vmul.f32 -0.5, %v1735_v37  ;;  %v701_v30 = vmul.f32 1.442695, %v673_v51 }
 0x174   :  { %v668_v45 = vsub.f32 0.0, %v652_v19  ;;  %v1745_v47 = vadd.f32 %v1646_v59, %v588_v35  ;;  %v801_v29 = vmul.f32 0.6931472, %v1222_v25  ;;  %v796_v25 = vand.u32 2147483647, %v1735_v37 }
 0x175   :  { %v873_v54 = vsel %vm617_vm14, %v1670_v10, %v857_v20  ;;  %v794_v34 = vadd.f32 1.0, %v793_v22  ;;  %vm620_vm9 = vcmp.ne.f32.partialorder %v1732_v31, %v1732_v31 }
 0x176   :  { %v1224_v56 = vpop.eup %1223  ;;  %v691_v33 = vmul.f32 1.442695, %v668_v45  ;;  %v658_v61 = vand.u32 2147483647, %v1745_v47  ;;  %v893_v38 = vmul.f32 %v1663_v52, %v873_v54  ;;  %v807_v1 = vsel %vm1751_vm1, %v804_v49, %v801_v29 }
 0x177   :  { %v1226_v10 = vpop.eup %1225  ;;  %v573_v60 = vpop.f32.mrf.mxu1  ;;  %v763_v3 = vadd.f32 1.0, %v1224_v56  ;;  %v766_v5 = vmul.f32 -0.5, %v1224_v56  ;;  %v863_v9 = vadd.f32 %v807_v1, %v607_v16  ;;  %v769_v11 = vand.u32 2147483647, %v1224_v56 }
 0x178   :  { %1227 = vpow2.f32 %v691_v33  ;;  %v674_v46 = vsub.f32 0.0, %v658_v61  ;;  %v1767_v13 = vadd.f32 %v1646_v59, %v573_v60  ;;  %v917_v7 = vsel %vm479_vm4, %v893_v38, 0.0 }
 0x179   :  { %918 = vadd.xlane.f32.xlu2 %v917_v7  ;;  %v756_v4 = vmul.f32 0.6931472, %v1226_v10  ;;  %1229 = vlog2.f32 %v763_v3  ;;  %v767_v44 = vadd.f32 1.0, %v766_v5  ;;  %v879_v26 = vsel %vm623_vm0, %v1679_v18, %v863_v9 }
 0x17a   :  { %v703_v15 = vmul.f32 1.442695, %v674_v46  ;;  %v653_v17 = vand.u32 2147483647, %v1767_v13  ;;  %1231 = vlog2.f32 %v790_v0  ;;  %v899_v28 = vmul.f32 %v1663_v52, %v879_v26 }
 0x17b   :  { %1233 = vpow2.f32 %v699_v41  ;;  %v591_v24 = vpop.f32.mrf.mxu3  ;;  %v762_v16 = vsel %vm1755_vm2, %v759_v2, %v756_v4  ;;  %v768_v6 = vmul.f32 %v1224_v56, %v767_v44  ;;  %v609_v29 = vmax.f32 %v1716_v8, 0.0 }
 0x17c   :  { %1235 = vpow2.f32 %v703_v15  ;;  %v669_v48 = vsub.f32 0.0, %v653_v17  ;;  %v1780_v27 = vadd.f32 %v1646_v59, %v591_v24  ;;  %v858_v36 = vadd.f32 %v762_v16, %v602_v39 }
 0x17d   :  { %v935_v50 = vsel %vm479_vm4, %v899_v28, 0.0  ;;  %vm770_vm7 = vcmp.lt.f32.partialorder %v769_v11, 0.0004427343  ;;  %v795_v43 = vmul.f32 %v1735_v37, %v794_v34  ;;  %vm797_vm8 = vcmp.lt.f32.partialorder %v796_v25, 0.0004427343 }
 0x17e   :  { %v1228_v62 = vpop.eup %1227  ;;  %v693_v21 = vmul.f32 1.442695, %v669_v48  ;;  %v659_v18 = vand.u32 2147483647, %v1780_v27  ;;  %936 = vadd.xlane.f32.xlu1 %v935_v50  ;;  %v874_v19 = vsel %vm618_vm3, %v1687_v32, %v858_v36  ;;  %v604_v38 = vmax.f32 %v1732_v31, 0.0 }
 0x17f   :  { %v1230_v12 = vpop.eup %1229  ;;  %v772_v39 = vadd.f32 1.0, %v1228_v62  ;;  %v775_v40 = vmul.f32 -0.5, %v1228_v62  ;;  %v894_v20 = vmul.f32 %v1663_v52, %v874_v19  ;;  %v778_v2 = vand.u32 2147483647, %v1228_v62 }
 0x180   :  { %v1232_v41 = vpop.eup %1231  ;;  %1237 = vpow2.f32 %v693_v21  ;;  %v675_v35 = vsub.f32 0.0, %v659_v18  ;;  %v765_v63 = vmul.f32 0.6931472, %v1230_v12  ;;  %v610_v28 = vmax.f32 %v1745_v47, 0.0 }
 0x181   :  { %v1795_v45 = vpop.eup %1233  ;;  %1239 = vlog2.f32 %v772_v39  ;;  %v792_v49 = vmul.f32 0.6931472, %v1232_v41  ;;  %v920_v32 = vsel %vm479_vm4, %v894_v20, 0.0  ;;  %v776_v55 = vadd.f32 1.0, %v775_v40 }
 0x182   :  { %v1236_v51 = vpop.eup %1235  ;;  %v771_v54 = vsel %vm770_vm7, %v768_v6, %v765_v63  ;;  %1241 = vpow2.f32 %v701_v30  ;;  %v705_v56 = vmul.f32 1.442695, %v675_v35  ;;  %921 = vadd.xlane.f32.xlu2 %v920_v32  ;;  %vm779_vm10 = vcmp.lt.f32.partialorder %v778_v2, 0.0004427343 }
 0x183   :  { %v594_v33 = vpop.f32.mrf.mxu3  ;;  %v859_v61 = vadd.f32 %v771_v54, %v603_v23  ;;  %v798_v10 = vsel %vm797_vm8, %v795_v43, %v792_v49  ;;  %v826_v60 = vadd.f32 1.0, %v1236_v51  ;;  %v829_v3 = vmul.f32 -0.5, %v1236_v51 }
 0x184   :  { %v1802_v0 = vadd.f32 %v1646_v59, %v594_v33  ;;  %v862_v37 = vadd.f32 %v798_v10, %v606_v53  ;;  %v777_v9 = vmul.f32 %v1228_v62, %v776_v55  ;;  %v605_v30 = vmax.f32 %v1767_v13, 0.0 }
 0x185   :  { %v875_v1 = vsel %vm619_vm5, %v1701_v58, %v859_v61  ;;  %1243 = vlog2.f32 %v826_v60  ;;  %v830_v24 = vadd.f32 1.0, %v829_v3  ;;  %v808_v39 = vadd.f32 1.0, %v1795_v45 }
 0x186   :  { %v1238_v5 = vpop.eup %1237  ;;  %v660_v46 = vand.u32 2147483647, %v1802_v0  ;;  %v895_v7 = vmul.f32 %v1663_v52, %v875_v1  ;;  %1245 = vpow2.f32 %v705_v56  ;;  %v878_v4 = vsel %vm622_vm6, %v1674_v14, %v862_v37 }
 0x187   :  { %v1240_v59 = vpop.eup %1239  ;;  %v781_v58 = vadd.f32 1.0, %v1238_v5  ;;  %v784_v44 = vmul.f32 -0.5, %v1238_v5  ;;  %v898_v22 = vmul.f32 %v1663_v52, %v878_v4  ;;  %v832_v14 = vand.u32 2147483647, %v1236_v51 }
 0x188   :  { %v676_v15 = vsub.f32 0.0, %v660_v46  ;;  %v923_v53 = vsel %vm479_vm4, %v895_v7, 0.0  ;;  %v774_v17 = vmul.f32 0.6931472, %v1240_v59  ;;  %v1242_v23 = vpop.eup %1241  ;;  %v787_v6 = vand.u32 2147483647, %v1238_v5 }
 0x189   :  { %924 = vadd.xlane.f32.xlu0 %v923_v53  ;;  %1247 = vlog2.f32 %v781_v58  ;;  %v785_v48 = vadd.f32 1.0, %v784_v44  ;;  %v932_v62 = vsel %vm479_vm4, %v898_v22, 0.0  ;;  %v817_v21 = vadd.f32 1.0, %v1242_v23 }
 0x18a   :  { %v707_v26 = vmul.f32 1.442695, %v676_v15  ;;  %v780_v16 = vsel %vm779_vm10, %v777_v9, %v774_v17  ;;  %v820_v18 = vmul.f32 -0.5, %v1242_v23  ;;  %v831_v19 = vmul.f32 %v1236_v51, %v830_v24 }
 0x18b   :  { %v860_v36 = vadd.f32 %v780_v16, %v604_v38  ;;  %v1244_v11 = vpop.eup %1243  ;;  %v786_v25 = vmul.f32 %v1238_v5, %v785_v48  ;;  %vm833_vm11 = vcmp.lt.f32.partialorder %v832_v14, 0.0004427343  ;;  %v823_v20 = vand.u32 2147483647, %v1242_v23 }
 0x18c   :  { %1249 = vpow2.f32 %v707_v26  ;;  %v1823_v50 = vpop.eup %1245  ;;  %v828_v12 = vmul.f32 0.6931472, %v1244_v11  ;;  %v811_v63 = vmul.f32 -0.5, %v1795_v45  ;;  %vm788_vm12 = vcmp.lt.f32.partialorder %v787_v6, 0.0004427343 }
 0x18d   :  { %v876_v34 = vsel %vm620_vm9, %v1732_v31, %v860_v36  ;;  %1251 = vlog2.f32 %v817_v21  ;;  %v821_v31 = vadd.f32 1.0, %v820_v18  ;;  %vm626_vm13 = vcmp.ne.f32.partialorder %v1745_v47, %v1745_v47 }
 0x18e   :  { %v896_v40 = vmul.f32 %v1663_v52, %v876_v34  ;;  %v834_v35 = vsel %vm833_vm11, %v831_v19, %v828_v12  ;;  %1253 = vlog2.f32 %v808_v39  ;;  %v812_v51 = vadd.f32 1.0, %v811_v63  ;;  %v1025_v63 = vld [vmem:[#allocation2] sm:$0x1] }
 0x18f   :  { %v1248_v41 = vpop.eup %1247  ;;  %v866_v54 = vadd.f32 %v834_v35, %v610_v28  ;;  %v814_v55 = vand.u32 2147483647, %v1795_v45  ;;  %v835_v61 = vadd.f32 1.0, %v1823_v50  ;;  %v838_v38 = vmul.f32 -0.5, %v1823_v50 }
 0x190   :  { %v926_v49 = vsel %vm479_vm4, %v896_v40, 0.0  ;;  %v783_v32 = vmul.f32 0.6931472, %v1248_v41  ;;  %vm621_vm14 = vcmp.ne.f32.partialorder %v1767_v13, %v1767_v13  ;;  %v822_v37 = vmul.f32 %v1242_v23, %v821_v31 }
 0x191   :  { %927 = vadd.xlane.f32.xlu1 %v926_v49  ;;  %933 = vadd.xlane.f32.xlu0 %v932_v62  ;;  %v882_v33 = vsel %vm626_vm13, %v1745_v47, %v866_v54  ;;  %vm1842_vm15 = vcmp.lt.f32.partialorder %v823_v20, 0.0004427343  ;;  %1255 = vlog2.f32 %v835_v61  ;;  %vm1847_vm0 = vcmp.lt.f32.partialorder %v814_v55, 0.0004427343 }
 0x192   :  { %v1250_v43 = vpop.eup %1249  ;;  %v789_v56 = vsel %vm788_vm12, %v786_v25, %v783_v32  ;;  %v902_v60 = vmul.f32 %v1663_v52, %v882_v33  ;;  %v813_v58 = vmul.f32 %v1795_v45, %v812_v51  ;;  %v839_v44 = vadd.f32 1.0, %v838_v38 }
 0x193   :  { %v861_v10 = vadd.f32 %v789_v56, %v605_v30  ;;  %v844_v1 = vadd.f32 1.0, %v1250_v43  ;;  %v1252_v2 = vpop.eup %1251  ;;  %v847_v5 = vmul.f32 -0.5, %v1250_v43  ;;  %v841_v24 = vand.u32 2147483647, %v1823_v50 }
 0x194   :  { %v1254_v47 = vpop.eup %1253  ;;  %v819_v7 = vmul.f32 0.6931472, %v1252_v2  ;;  %v944_v15 = vsel %vm479_vm4, %v902_v60, 0.0  ;;  %v1289_v26 = vmov 0   ;;  %vm625_vm1 = vcmp.ne.f32.partialorder %v1716_v8, %v1716_v8 }
 0x195   :  { %v877_v46 = vsel %vm621_vm14, %v1767_v13, %v861_v10  ;;  %1257 = vlog2.f32 %v844_v1  ;;  %v810_v4 = vmul.f32 0.6931472, %v1254_v47  ;;  %v848_v17 = vadd.f32 1.0, %v847_v5  ;;  %1126 = vset.pattern.permute.xlu1 %v1289_v26  ;;  %1127 = vset.pattern.permute.xlu0 %v1289_v26 }
 0x196   :  { %v897_v59 = vmul.f32 %v1663_v52, %v877_v46  ;;  %v825_v53 = vsel %vm1842_vm15, %v822_v37, %v819_v7  ;;  %v850_v16 = vand.u32 2147483647, %v1250_v43  ;;  %vm624_vm2 = vcmp.ne.f32.partialorder %v1694_v42, %v1694_v42 }
 0x197   :  { %v865_v22 = vadd.f32 %v825_v53, %v609_v29  ;;  %v816_v23 = vsel %vm1847_vm0, %v813_v58, %v810_v4  ;;  %v1256_v48 = vpop.eup %1255  ;;  %v611_v29 = vmax.f32 %v1780_v27, 0.0  ;;  %v840_v11 = vmul.f32 %v1823_v50, %v839_v44 }
 0x198   :  { %v929_v13 = vsel %vm479_vm4, %v897_v59, 0.0  ;;  %v864_v45 = vadd.f32 %v816_v23, %v608_v57  ;;  %v837_v6 = vmul.f32 0.6931472, %v1256_v48  ;;  %v849_v21 = vmul.f32 %v1250_v43, %v848_v17 }
 0x199   :  { %930 = vadd.xlane.f32.xlu2 %v929_v13  ;;  %945 = vadd.xlane.f32.xlu1 %v944_v15  ;;  %v881_v14 = vsel %vm625_vm1, %v1716_v8, %v865_v22  ;;  %vm842_vm3 = vcmp.lt.f32.partialorder %v841_v24, 0.0004427343  ;;  %v612_v18 = vmax.f32 %v1802_v0, 0.0  ;;  %vm851_vm5 = vcmp.lt.f32.partialorder %v850_v16, 0.0004427343 }
 0x19a   :  { %v901_v30 = vmul.f32 %v1663_v52, %v881_v14  ;;  %v880_v36 = vsel %vm624_vm2, %v1694_v42, %v864_v45  ;;  %v843_v34 = vsel %vm842_vm3, %v840_v11, %v837_v6  ;;  %vm628_vm6 = vcmp.ne.f32.partialorder %v1802_v0, %v1802_v0 }
 0x19b   :  { %v1258_v28 = vpop.eup %1257  ;;  %v900_v62 = vmul.f32 %v1663_v52, %v880_v36  ;;  %v867_v19 = vadd.f32 %v843_v34, %v611_v29  ;;  %vm627_vm7 = vcmp.ne.f32.partialorder %v1780_v27, %v1780_v27  ;;  %v953_v54 = vlaneseq }
 0x19c   :  { %v846_v57 = vmul.f32 0.6931472, %v1258_v28  ;;  %v941_v8 = vsel %vm479_vm4, %v901_v30, 0.0 }
 0x19d   :  { %942 = vadd.xlane.f32.xlu0 %v941_v8  ;;  %v938_v42 = vsel %vm479_vm4, %v900_v62, 0.0  ;;  %v883_v40 = vsel %vm627_vm7, %v1780_v27, %v867_v19  ;;  %v1887_v31 = vshrl.u32 %v953_v54, 7  ;;  %v1890_v51 = vand.u32 127, %v953_v54 }
 0x19e   :  { %v852_v12 = vsel %vm851_vm5, %v849_v21, %v846_v57  ;;  %v903_v35 = vmul.f32 %v1663_v52, %v883_v40 }
 0x19f   :  { %v868_v39 = vadd.f32 %v852_v12, %v612_v18  ;;  %v956_v43 = vadd.s32 16, %v1887_v31  ;;  %v957_v56 = vadd.s32 24, %v1887_v31  ;;  %v958_v33 = vadd.s32 32, %v1887_v31 }
 0x1a0   :  { %v947_v20 = vsel %vm479_vm4, %v903_v35, 0.0  ;;  %v959_v10 = vadd.s32 40, %v1887_v31  ;;  %v960_v37 = vadd.s32 48, %v1887_v31  ;;  %v961_v7 = vadd.s32 56, %v1887_v31 }
 0x1a1   :  { %939 = vadd.xlane.f32.xlu2 %v938_v42  ;;  %v884_v50 = vsel %vm628_vm6, %v1802_v0, %v868_v39  ;;  %v955_v0 = vadd.s32 8, %v1887_v31  ;;  %vm974_vm9 = vcmp.eq.s32.totalorder %v956_v43, %v1890_v51  ;;  %vm975_vm10 = vcmp.eq.s32.totalorder %v957_v56, %v1890_v51 }
 0x1a2   :  { %v904_v25 = vmul.f32 %v1663_v52, %v884_v50  ;;  %vm976_vm11 = vcmp.eq.s32.totalorder %v958_v33, %v1890_v51  ;;  %vm977_vm12 = vcmp.eq.s32.totalorder %v959_v10, %v1890_v51  ;;  %vm978_vm13 = vcmp.eq.s32.totalorder %v960_v37, %v1890_v51 }
 0x1a3   :  { %vm973_vm8 = vcmp.eq.s32.totalorder %v955_v0, %v1890_v51  ;;  %vm979_vm14 = vcmp.eq.s32.totalorder %v961_v7, %v1890_v51  ;;  %v962_v15 = vadd.s32 64, %v1887_v31  ;;  %v963_v13 = vadd.s32 72, %v1887_v31 }
 0x1a4   :  { %v950_v41 = vsel %vm479_vm4, %v904_v25, 0.0  ;;  %vm972_vm4 = vcmp.eq.s32.totalorder %v1887_v31, %v1890_v51  ;;  %v964_v26 = vadd.s32 80, %v1887_v31  ;;  %v965_v14 = vadd.s32 88, %v1887_v31 }
 0x1a5   :  { %951 = vadd.xlane.f32.xlu0 %v950_v41  ;;  %vm980_vm15 = vcmp.eq.s32.totalorder %v962_v15, %v1890_v51  ;;  %vm981_vm0 = vcmp.eq.s32.totalorder %v963_v13, %v1890_v51  ;;  %v966_v36 = vadd.s32 96, %v1887_v31  ;;  %v967_v11 = vadd.s32 104, %v1887_v31 }
 0x1a6   :  { %vm982_vm1 = vcmp.eq.s32.totalorder %v964_v26, %v1890_v51  ;;  %vm983_vm2 = vcmp.eq.s32.totalorder %v965_v14, %v1890_v51  ;;  %v968_v34 = vadd.s32 112, %v1887_v31  ;;  %v969_v42 = vadd.s32 120, %v1887_v31 }
 0x1a7   :  { %vm984_vm3 = vcmp.eq.s32.totalorder %v966_v36, %v1890_v51  ;;  %vm985_vm5 = vcmp.eq.s32.totalorder %v967_v11, %v1890_v51 }
 0x1a8   :  { %vm986_vm6 = vcmp.eq.s32.totalorder %v968_v34, %v1890_v51  ;;  %vm987_vm7 = vcmp.eq.s32.totalorder %v969_v42, %v1890_v51 }
 0x1a9   :  { %948 = vadd.xlane.f32.xlu2 %v947_v20 }
 0x1b2   :  { %1028 = vperm.xlu1 %1126, %v1025_v63  }
 0x1cb   :  { %v907_v32 = vpop.xlane.xlu0 %906 }
 0x1cc   :  { %v988_v60 = vsel %vm972_vm4, %v907_v32, 0.0 }
 0x1d3   :  { %v910_v55 = vpop.xlane.xlu0 %909 }
 0x1d4   :  { %v989_v61 = vsel %vm973_vm8, %v910_v55, 0.0 }
 0x1d5   :  { %v1004_v2 = vadd.f32 %v989_v61, %v988_v60 }
 0x1dc   :  { %v913_v49 = vpop.xlane.xlu1 %912 }
 0x1dd   :  { %v990_v1 = vsel %vm974_vm9, %v913_v49, 0.0 }
 0x1de   :  { %v1005_v47 = vadd.f32 %v1004_v2, %v990_v1 }
 0x1e4   :  { %v916_v27 = vpop.xlane.xlu1 %915 }
 0x1e5   :  { %v991_v5 = vsel %vm975_vm10, %v916_v27, 0.0 }
 0x1e6   :  { %v1006_v59 = vadd.f32 %v1005_v47, %v991_v5 }
 0x1ec   :  { %v919_v52 = vpop.xlane.xlu2 %918 }
 0x1ed   :  { %v992_v9 = vsel %vm976_vm11, %v919_v52, 0.0 }
 0x1ee   :  { %v1007_v58 = vadd.f32 %v1006_v59, %v992_v9 }
 0x1f1   :  { %v937_v38 = vpop.xlane.xlu1 %936 }
 0x1f2   :  { %v998_v6 = vsel %vm982_vm1, %v937_v38, 0.0 }
 0x1f5   :  { %v922_v46 = vpop.xlane.xlu2 %921 }
 0x1f6   :  { %v993_v4 = vsel %vm977_vm12, %v922_v46, 0.0 }
 0x1f7   :  { %v1008_v17 = vadd.f32 %v1007_v58, %v993_v4 }
 0x1fc   :  { %v925_v3 = vpop.xlane.xlu0 %924 }
 0x1fd   :  { %v994_v53 = vsel %vm978_vm13, %v925_v3, 0.0 }
 0x1fe   :  { %v1009_v23 = vadd.f32 %v1008_v17, %v994_v53 }
 0x204   :  { %v928_v44 = vpop.xlane.xlu1 %927  ;;  %v934_v24 = vpop.xlane.xlu0 %933 }
 0x205   :  { %v995_v22 = vsel %vm979_vm14, %v928_v44, 0.0  ;;  %v997_v28 = vsel %vm981_vm0, %v934_v24, 0.0 }
 0x206   :  { %v1010_v45 = vadd.f32 %v1009_v23, %v995_v22 }
 0x20c   :  { %v931_v16 = vpop.xlane.xlu2 %930  ;;  %v946_v19 = vpop.xlane.xlu1 %945 }
 0x20d   :  { %v996_v48 = vsel %vm980_vm15, %v931_v16, 0.0  ;;  %v1001_v50 = vsel %vm985_vm5, %v946_v19, 0.0 }
 0x20e   :  { %v1011_v29 = vadd.f32 %v1010_v45, %v996_v48 }
 0x210   :  { %v1012_v30 = vadd.f32 %v1011_v29, %v997_v28  ;;  %v943_v62 = vpop.xlane.xlu0 %942 }
 0x211   :  { %v1000_v12 = vsel %vm984_vm3, %v943_v62, 0.0 }
 0x212   :  { %v1013_v21 = vadd.f32 %v1012_v30, %v998_v6 }
 0x214   :  { %v940_v57 = vpop.xlane.xlu2 %939 }
 0x215   :  { %v999_v18 = vsel %vm983_vm2, %v940_v57, 0.0 }
 0x216   :  { %v1014_v8 = vadd.f32 %v1013_v21, %v999_v18 }
 0x218   :  { %v1015_v39 = vadd.f32 %v1014_v8, %v1000_v12  ;;  %v952_v40 = vpop.xlane.xlu0 %951 }
 0x219   :  { %v1003_v63 = vsel %vm987_vm7, %v952_v40, 0.0 }
 0x21a   :  { %v1016_v41 = vadd.f32 %v1015_v39, %v1001_v50 }
 0x21c   :  { %v949_v25 = vpop.xlane.xlu2 %948 }
 0x21d   :  { %v1002_v35 = vsel %vm986_vm6, %v949_v25, 0.0 }
 0x21e   :  { %v1017_v20 = vadd.f32 %v1016_v41, %v1002_v35 }
 0x220   :  { %v1018_v49 = vadd.f32 %v1017_v20, %v1003_v63 }
 0x222   :  { %v1019_v32 = vrot.slane %v1018_v49, 4 }
 0x224   :  { %v1020_v54 = vadd.f32 %v1019_v32, %v1018_v49  ;;  %v1029_v27 = vpop.permute.xlu1 %1028 }
 0x225   :  { %v1031_v52 = vperm.slane %v1029_v27, 0 }
 0x226   :  { %v1021_v0 = vrot.slane %v1020_v54, 2 }
 0x228   :  { %v1022_v55 = vadd.f32 %v1021_v0, %v1020_v54 }
 0x22a   :  { %v1023_v43 = vrot.slane %v1022_v55, 1 }
 0x22c   :  { %v1024_v31 = vadd.f32 %v1023_v43, %v1022_v55 }
 0x22e   :  { %v1032_v56 = vadd.f32 %v1031_v52, %v1024_v31 }
 0x230   :  { %v1103_v33 = vmul.f32 -1.442695, %v1032_v56 }
 0x232   :  { %1259 = vpow2.f32 %v1103_v33 }
 0x238   :  { %v1260_v61 = vpop.eup %1259 }
 0x239   :  { %v1036_v51 = vadd.f32 1.0, %v1260_v61 }
 0x23b   :  { %1261 = vrcp.f32 %v1036_v51  ;;  %v1048_v1 = vand.u32 2147483648, %v1036_v51  ;;  %v1046_v37 = vand.u32 2147483647, %v1036_v51  ;;  %vm1042_vm4 = vweird.f32 %v1036_v51 }
 0x23d   :  { %v1049_v5 = vor.u32 1.1754944e-38, %v1048_v1  ;;  %vm1047_vm10 = vcmp.eq.f32.partialorder %v1046_v37, 8.507059e+37 }
 0x241   :  { %v1262_v38 = vpop.eup %1261 }
 0x242   :  { %v1038_v10 = vmul.f32 %v1262_v38, %v1036_v51  ;;  %vm1043_vm8 = vweird.f32 %v1262_v38 }
 0x243   :  { %vm1044_vm9 = vmor %vm1042_vm4, %vm1043_vm8 }
 0x244   :  { %v1039_v60 = vsub.f32 1.0, %v1038_v10 }
 0x246   :  { %v1040_v2 = vmul.f32 %v1262_v38, %v1039_v60 }
 0x248   :  { %v1041_v3 = vadd.f32 %v1262_v38, %v1040_v2 }
 0x24a   :  { %v1045_v47 = vsel %vm1044_vm9, %v1262_v38, %v1041_v3 }
 0x24b   :  { %v1050_v46 = vsel %vm1047_vm10, %v1049_v5, %v1045_v47 }
 0x24c   :  { %1052 = vst [vmem:[#allocation3] sm:$0x1] %v1050_v46 }
 0x24d   :  { %1063 = dma.vmem_to_hbm [thread:$0]  %s1059_s26, 16, %s1061_s29, [#allocation4]  }
 0x24e   :  { %1287 = dma.done.wait [#allocation4], 16  }
 0x24f   :  { %1288 = vsyncadd [#allocation4], 4294967280 }
 0x250   :  { %1068 = vsyncpa [#allocation4], 1 }

</bundles_post_ra>
